<compile_context>
chip_gen: v5e
topology: v5e:2x2
jax: 0.10.0
libtpu: 0.0.40
codegen_flags: <defaults>
</compile_context>

<pallas_src>
import functools

import numpy as np
import jax
import jax.numpy as jnp
from jax import lax
from jax.experimental import pallas as pl
from jax.experimental.pallas import tpu as pltpu


def rnn_encoder_kernel(x_ref, w_in_ref, b_in_ref,
                       w_ih_ref, b_ih_ref,
                       w_hh_ref,
                       w_head_ref, b_head_ref,
                       out_ref,
                       *, T, B, H, C):
    """B here is the sublane-padded batch (multiple of 8)."""
    G = 4 * H                                     # gate width per direction (i,f,g,o)

    # ---- input_linear + tanh over all time steps in one matmul ----
    x = x_ref[...]                                                    # (T*B, D) bf16
    xp = jnp.tanh(
        jnp.dot(x, w_in_ref[...], preferred_element_type=jnp.float32)
        + b_in_ref[...])                                              # (T*B, E) f32

    # ---- fused input->gate projection for BOTH directions (kept as a value;
    #      ~T*B*8H*4 bytes -- fine at demo size, see TODO for production) ----
    xg = (jnp.dot(xp.astype(jnp.bfloat16), w_ih_ref[...],
                  preferred_element_type=jnp.float32)
          + b_ih_ref[...])                                            # (T*B, 8H) f32

    # ---- loop-invariant values hoisted out of the recurrence ----
    w_hh = w_hh_ref[...]                                              # (2H, 8H) bf16, block-diag
    lane = lax.broadcasted_iota(jnp.int32, (B, 2 * G), 1)
    lm = lane % G
    g_lane = (lm >= 2 * H) & (lm < 3 * H)                             # 'g' (cell-candidate) lanes
    # sigmoid(x) = 0.5*tanh(0.5*x) + 0.5 ; tanh lanes pass through unchanged.
    sc = jnp.where(g_lane, 1.0, 0.5).astype(jnp.float32)              # pre/post scale
    off = jnp.where(g_lane, 0.0, 0.5).astype(jnp.float32)             # post offset

    zeros_h = jnp.zeros((B, H), jnp.float32)
    c_f, c_b = zeros_h, zeros_h
    h_fb = jnp.zeros((B, 2 * H), jnp.float32)                         # [h_f | h_b]

    # ---- fully unrolled, interleaved bidirectional recurrence ----
    for s in range(T):
        t_f = s
        t_b = T - 1 - s
        # One block-diagonal recurrent matmul for both directions.
        rec = jnp.dot(h_fb.astype(jnp.bfloat16), w_hh,
                      preferred_element_type=jnp.float32)             # (B, 8H)
        gates = jnp.concatenate(
            [xg[t_f * B:(t_f + 1) * B, 0:G],                          # fwd gates @ t_f
             xg[t_b * B:(t_b + 1) * B, G:2 * G]], axis=-1) + rec      # bwd gates @ t_b
        # Single EUP tanh over the full (B, 8H) gates vector.
        tg = jnp.tanh(gates * sc)
        act = tg * sc + off                                           # i,f,o->sigmoid ; g->tanh
        i_f = act[:, 0:H];        f_f = act[:, H:2 * H]
        g_f = act[:, 2 * H:3 * H]; o_f = act[:, 3 * H:4 * H]
        i_b = act[:, G:G + H];     f_b = act[:, G + H:G + 2 * H]
        g_b = act[:, G + 2 * H:G + 3 * H]; o_b = act[:, G + 3 * H:G + 4 * H]
        c_f = f_f * c_f + i_f * g_f
        c_b = f_b * c_b + i_b * g_b
        h_f = o_f * jnp.tanh(c_f)
        h_b = o_b * jnp.tanh(c_b)
        h_fb = jnp.concatenate([h_f, h_b], axis=-1)

    # torch: h = h[0] + h[1] / 2   (faithful to the module's asymmetric weighting)
    h = h_fb[:, 0:H] + 0.5 * h_fb[:, H:2 * H]

    # ---- fused output heads: [output_linear | output_linear2] ----
    out = (jnp.dot(h.astype(jnp.bfloat16), w_head_ref[...],
                   preferred_element_type=jnp.float32) + b_head_ref[...])
    logits = out[:, 0:C]
    m = jnp.max(logits, axis=-1, keepdims=True)
    e = jnp.exp(logits - m)
    probs = e / jnp.sum(e, axis=-1, keepdims=True)     # exact divide: rows sum to 1
    out_ref[...] = jnp.concatenate([probs, out[:, C:]], axis=-1)


def rnn_encoder_forward(x_idx, params):
    """x_idx: (B, T) int32 token indices -> (softmax probs, condition vector)."""
    emb = params["embedding"]
    B, T = x_idx.shape
    H = params["w_hh_f"].shape[0]
    C = params["w_out"].shape[1]
    Cond = params["w_out2"].shape[1]
    B_pad = ((B + 7) // 8) * 8                     # sublane-align the batch

    # glue: embedding gather directly in time-major order, padded rows zeroed.
    x_tm = emb[x_idx.T]                                               # (T, B, D)
    x_tm = jnp.pad(x_tm, ((0, 0), (0, B_pad - B), (0, 0)))            # (T, B_pad, D)
    x_emb = x_tm.reshape(T * B_pad, -1).astype(jnp.bfloat16)

    # one-time weight prep:
    #   * fuse per-direction input->gate weights,
    #   * build the block-diagonal recurrent weight (2H, 8H),
    #   * fuse the two output heads; cast matmul weights to bf16.
    w_ih = jnp.concatenate([params["w_ih_f"], params["w_ih_b"]],
                           axis=1).astype(jnp.bfloat16)               # (E, 8H)
    b_ih = jnp.concatenate([params["b_f"], params["b_b"]], axis=1)    # (1, 8H) f32
    zhg = jnp.zeros((H, 4 * H), params["w_hh_f"].dtype)
    w_hh_bd = jnp.concatenate(
        [jnp.concatenate([params["w_hh_f"], zhg], axis=1),
         jnp.concatenate([zhg, params["w_hh_b"]], axis=1)],
        axis=0).astype(jnp.bfloat16)                                  # (2H, 8H) block-diag
    w_head = jnp.concatenate([params["w_out"], params["w_out2"]],
                             axis=1).astype(jnp.bfloat16)             # (H, C+Cond)
    b_head = jnp.concatenate([params["b_out"], params["b_out2"]], axis=1)

    ins = (x_emb,
           params["w_in"].astype(jnp.bfloat16), params["b_in"],
           w_ih, b_ih,
           w_hh_bd,
           w_head, b_head)

    vmem = pl.BlockSpec(memory_space=pltpu.MemorySpace.VMEM)
    kernel = functools.partial(rnn_encoder_kernel, T=T, B=B_pad, H=H, C=C)

    out = pl.pallas_call(
        kernel,
        out_shape=jax.ShapeDtypeStruct((B_pad, C + Cond), jnp.float32),
        in_specs=[vmem] * len(ins),
        out_specs=vmem,
        compiler_params=pltpu.CompilerParams(vmem_limit_bytes=32 * 1024 * 1024),
    )(*ins)
    return out[:B, :C], out[:B, C:]


def init_params(key, vocab, D, E, H, C, Cond):
    ks = jax.random.split(key, 13)
    w = lambda k, s: (0.1 * jax.random.normal(k, s)).astype(jnp.float32)
    return dict(
        embedding=w(ks[0], (vocab, D)),
        w_in=w(ks[1], (D, E)), b_in=w(ks[2], (1, E)),
        # per-direction LSTM weights; biases are (b_ih + b_hh) pre-summed
        w_ih_f=w(ks[3], (E, 4 * H)), w_hh_f=w(ks[4], (H, 4 * H)), b_f=w(ks[5], (1, 4 * H)),
        w_ih_b=w(ks[6], (E, 4 * H)), w_hh_b=w(ks[7], (H, 4 * H)), b_b=w(ks[8], (1, 4 * H)),
        w_out=w(ks[9], (H, C)), b_out=w(ks[10], (1, C)),
        w_out2=w(ks[11], (H, Cond)), b_out2=w(ks[12], (1, Cond)),
    )


def reference(x_idx, p):
    """Pure numpy (f32) reference of the same math (PyTorch semantics)."""
    x = p["embedding"][x_idx]                       # (B, T, D)
    xp = np.tanh(x @ p["w_in"] + p["b_in"])         # (B, T, E)
    B, T, _ = xp.shape
    H = p["w_hh_f"].shape[0]
    sig = lambda z: 1.0 / (1.0 + np.exp(-z))

    def run(w_ih, w_hh, b, order):
        h = np.zeros((B, H), np.float32)
        c = np.zeros((B, H), np.float32)
        for t in order:
            gates = xp[:, t, :] @ w_ih + b + h @ w_hh
            i = sig(gates[:, 0:H]); f = sig(gates[:, H:2*H])
            g = np.tanh(gates[:, 2*H:3*H]); o = sig(gates[:, 3*H:4*H])
            c = f * c + i * g
            h = o * np.tanh(c)
        return h

    h_f = run(p["w_ih_f"], p["w_hh_f"], p["b_f"], range(T))
    h_b = run(p["w_ih_b"], p["w_hh_b"], p["b_b"], range(T - 1, -1, -1))
    h = h_f + h_b / 2.0
    logits = h @ p["w_out"] + p["b_out"]
    e = np.exp(logits - logits.max(-1, keepdims=True))
    probs = e / e.sum(-1, keepdims=True)
    hcond = h @ p["w_out2"] + p["b_out2"]
    return probs, hcond


if __name__ == "__main__":
    vocab, D, E, H, C, Cond = 20, 16, 16, 32, 10, 8   # input_size=D, embedding_size=E,
    B, T = 2, 8                                       # hidden=H, class_num=C, condition_size=Cond
    key = jax.random.PRNGKey(0)
    pkey, xkey = jax.random.split(key)
    params = init_params(pkey, vocab, D, E, H, C, Cond)
    x_idx = jax.random.randint(xkey, (B, T), 0, vocab, dtype=jnp.int32)

    probs, hcond = rnn_encoder_forward(x_idx, params)
    jax.block_until_ready((probs, hcond))

    ref_probs, ref_h = reference(np.asarray(x_idx),
                                 {k: np.asarray(v) for k, v in params.items()})
    # tolerances account for bf16 matmul operands vs. the full-f32 numpy ref.
    assert np.allclose(np.asarray(probs), ref_probs, rtol=2e-2, atol=2e-3), "probs mismatch"
    assert np.allclose(np.asarray(hcond), ref_h, rtol=2e-2, atol=2e-3), "hcond mismatch"
    assert np.allclose(np.asarray(probs).sum(-1), 1.0, atol=1e-3)

    print("KERNEL_OK")
</pallas_src>

<mosaic_0001>
module attributes {stable_mosaic.version = 11 : i64} {
  func.func @rnn_encoder_kernel(%arg0: memref<64x16xbf16, #tpu.memory_space<vmem>>, %arg1: memref<16x16xbf16, #tpu.memory_space<vmem>>, %arg2: memref<1x16xf32, #tpu.memory_space<vmem>>, %arg3: memref<16x256xbf16, #tpu.memory_space<vmem>>, %arg4: memref<1x256xf32, #tpu.memory_space<vmem>>, %arg5: memref<64x256xbf16, #tpu.memory_space<vmem>>, %arg6: memref<32x18xbf16, #tpu.memory_space<vmem>>, %arg7: memref<1x18xf32, #tpu.memory_space<vmem>>, %arg8: memref<8x18xf32, #tpu.memory_space<vmem>>) attributes {dimension_semantics = [], scalar_prefetch = 0 : i64, scratch_operands = 0 : i64, tpu.core_type = #tpu.core_type<tc>} {
    %c0 = arith.constant 0 : index
    %c0_0 = arith.constant 0 : index
    %0 = vector.load %arg0[%c0, %c0_0] : memref<64x16xbf16, #tpu.memory_space<vmem>>, vector<64x16xbf16>
    %c0_1 = arith.constant 0 : index
    %c0_2 = arith.constant 0 : index
    %1 = vector.load %arg1[%c0_1, %c0_2] : memref<16x16xbf16, #tpu.memory_space<vmem>>, vector<16x16xbf16>
    %cst = arith.constant dense<0.000000e+00> : vector<64x16xf32>
    %2 = tpu.matmul %0, %1, %cst {dimension_numbers = #tpu.dot_dimension_numbers<[1], [0], [0], [1], [0, 0, 1, 1], [], []>} : vector<64x16xbf16>, vector<16x16xbf16>, vector<64x16xf32> -> vector<64x16xf32>
    %c0_3 = arith.constant 0 : index
    %c0_4 = arith.constant 0 : index
    %3 = vector.load %arg2[%c0_3, %c0_4] : memref<1x16xf32, #tpu.memory_space<vmem>>, vector<1x16xf32>
    %4 = vector.broadcast %3 : vector<1x16xf32> to vector<64x16xf32>
    %5 = arith.addf %2, %4 : vector<64x16xf32>
    %6 = math.tanh %5 : vector<64x16xf32>
    %7 = arith.truncf %6 : vector<64x16xf32> to vector<64x16xbf16>
    %c0_5 = arith.constant 0 : index
    %c0_6 = arith.constant 0 : index
    %8 = vector.load %arg3[%c0_5, %c0_6] : memref<16x256xbf16, #tpu.memory_space<vmem>>, vector<16x256xbf16>
    %cst_7 = arith.constant dense<0.000000e+00> : vector<64x256xf32>
    %9 = tpu.matmul %7, %8, %cst_7 {dimension_numbers = #tpu.dot_dimension_numbers<[1], [0], [0], [1], [0, 0, 1, 1], [], []>} : vector<64x16xbf16>, vector<16x256xbf16>, vector<64x256xf32> -> vector<64x256xf32>
    %c0_8 = arith.constant 0 : index
    %c0_9 = arith.constant 0 : index
    %10 = vector.load %arg4[%c0_8, %c0_9] : memref<1x256xf32, #tpu.memory_space<vmem>>, vector<1x256xf32>
    %11 = vector.broadcast %10 : vector<1x256xf32> to vector<64x256xf32>
    %12 = arith.addf %9, %11 : vector<64x256xf32>
    %c0_10 = arith.constant 0 : index
    %c0_11 = arith.constant 0 : index
    %13 = vector.load %arg5[%c0_10, %c0_11] : memref<64x256xbf16, #tpu.memory_space<vmem>>, vector<64x256xbf16>
    %14 = tpu.iota {dimensions = array<i32: 1>} : vector<8x256xi32>
    %c128_i32 = arith.constant 128 : i32
    %c0_i32 = arith.constant 0 : i32
    %15 = arith.cmpi eq, %c128_i32, %c0_i32 : i32
    %c1_i32 = arith.constant 1 : i32
    %16 = arith.select %15, %c1_i32, %c128_i32 : i32
    %17 = vector.broadcast %16 : i32 to vector<8x256xi32>
    %18 = arith.remsi %14, %17 : vector<8x256xi32>
    %c0_i32_12 = arith.constant 0 : i32
    %19 = vector.broadcast %c0_i32_12 : i32 to vector<8x256xi32>
    %20 = arith.cmpi ne, %18, %19 : vector<8x256xi32>
    %c0_i32_13 = arith.constant 0 : i32
    %21 = vector.broadcast %c0_i32_13 : i32 to vector<8x256xi32>
    %22 = arith.cmpi slt, %18, %21 : vector<8x256xi32>
    %c0_i32_14 = arith.constant 0 : i32
    %23 = arith.cmpi slt, %16, %c0_i32_14 : i32
    %24 = vector.broadcast %23 : i1 to vector<8x256xi1>
    %25 = vector.broadcast %24 : vector<8x256xi1> to vector<8x256xi1>
    %26 = arith.xori %22, %25 : vector<8x256xi1>
    %27 = arith.andi %26, %20 : vector<8x256xi1>
    %28 = vector.broadcast %16 : i32 to vector<8x256xi32>
    %29 = arith.addi %18, %28 : vector<8x256xi32>
    %30 = arith.select %27, %29, %18 : vector<8x256xi1>, vector<8x256xi32>
    %c64_i32 = arith.constant 64 : i32
    %31 = vector.broadcast %c64_i32 : i32 to vector<8x256xi32>
    %32 = arith.cmpi sge, %30, %31 : vector<8x256xi32>
    %c96_i32 = arith.constant 96 : i32
    %33 = vector.broadcast %c96_i32 : i32 to vector<8x256xi32>
    %34 = arith.cmpi slt, %30, %33 : vector<8x256xi32>
    %35 = arith.andi %32, %34 : vector<8x256xi1>
    %cst_15 = arith.constant 1.000000e+00 : f32
    %cst_16 = arith.constant 5.000000e-01 : f32
    %36 = vector.broadcast %cst_15 : f32 to vector<8x256xf32>
    %37 = vector.broadcast %cst_16 : f32 to vector<8x256xf32>
    %38 = arith.select %35, %36, %37 : vector<8x256xi1>, vector<8x256xf32>
    %cst_17 = arith.constant 0.000000e+00 : f32
    %cst_18 = arith.constant 5.000000e-01 : f32
    %39 = vector.broadcast %cst_17 : f32 to vector<8x256xf32>
    %40 = vector.broadcast %cst_18 : f32 to vector<8x256xf32>
    %41 = arith.select %35, %39, %40 : vector<8x256xi1>, vector<8x256xf32>
    %cst_19 = arith.constant 0.000000e+00 : f32
    %42 = vector.broadcast %cst_19 : f32 to vector<8x32xf32>
    %cst_20 = arith.constant 0.000000e+00 : f32
    %43 = vector.broadcast %cst_20 : f32 to vector<8x64xf32>
    %44 = arith.truncf %43 : vector<8x64xf32> to vector<8x64xbf16>
    %cst_21 = arith.constant dense<0.000000e+00> : vector<8x256xf32>
    %45 = tpu.matmul %44, %13, %cst_21 {dimension_numbers = #tpu.dot_dimension_numbers<[1], [0], [0], [1], [0, 0, 1, 1], [], []>} : vector<8x64xbf16>, vector<64x256xbf16>, vector<8x256xf32> -> vector<8x256xf32>
    %46 = vector.extract_strided_slice %12 {offsets = [0, 0], sizes = [8, 128], strides = [1, 1]} : vector<64x256xf32> to vector<8x128xf32>
    %47 = vector.extract_strided_slice %12 {offsets = [56, 128], sizes = [8, 128], strides = [1, 1]} : vector<64x256xf32> to vector<8x128xf32>
    %48 = tpu.concatenate %46, %47 in 1 : vector<8x128xf32>, vector<8x128xf32> -> vector<8x256xf32>
    %49 = arith.addf %48, %45 : vector<8x256xf32>
    %50 = arith.mulf %49, %38 : vector<8x256xf32>
    %51 = math.tanh %50 : vector<8x256xf32>
    %52 = arith.mulf %51, %38 : vector<8x256xf32>
    %53 = arith.addf %52, %41 : vector<8x256xf32>
    %54 = vector.extract_strided_slice %53 {offsets = [0, 0], sizes = [8, 32], strides = [1, 1]} : vector<8x256xf32> to vector<8x32xf32>
    %55 = vector.extract_strided_slice %53 {offsets = [0, 32], sizes = [8, 32], strides = [1, 1]} : vector<8x256xf32> to vector<8x32xf32>
    %56 = vector.extract_strided_slice %53 {offsets = [0, 64], sizes = [8, 32], strides = [1, 1]} : vector<8x256xf32> to vector<8x32xf32>
    %57 = vector.extract_strided_slice %53 {offsets = [0, 96], sizes = [8, 32], strides = [1, 1]} : vector<8x256xf32> to vector<8x32xf32>
    %58 = vector.extract_strided_slice %53 {offsets = [0, 128], sizes = [8, 32], strides = [1, 1]} : vector<8x256xf32> to vector<8x32xf32>
    %59 = vector.extract_strided_slice %53 {offsets = [0, 160], sizes = [8, 32], strides = [1, 1]} : vector<8x256xf32> to vector<8x32xf32>
    %60 = vector.extract_strided_slice %53 {offsets = [0, 192], sizes = [8, 32], strides = [1, 1]} : vector<8x256xf32> to vector<8x32xf32>
    %61 = vector.extract_strided_slice %53 {offsets = [0, 224], sizes = [8, 32], strides = [1, 1]} : vector<8x256xf32> to vector<8x32xf32>
    %62 = arith.mulf %55, %42 : vector<8x32xf32>
    %63 = arith.mulf %54, %56 : vector<8x32xf32>
    %64 = arith.addf %62, %63 : vector<8x32xf32>
    %65 = arith.mulf %59, %42 : vector<8x32xf32>
    %66 = arith.mulf %58, %60 : vector<8x32xf32>
    %67 = arith.addf %65, %66 : vector<8x32xf32>
    %68 = math.tanh %64 : vector<8x32xf32>
    %69 = arith.mulf %57, %68 : vector<8x32xf32>
    %70 = math.tanh %67 : vector<8x32xf32>
    %71 = arith.mulf %61, %70 : vector<8x32xf32>
    %72 = tpu.concatenate %69, %71 in 1 : vector<8x32xf32>, vector<8x32xf32> -> vector<8x64xf32>
    %73 = arith.truncf %72 : vector<8x64xf32> to vector<8x64xbf16>
    %cst_22 = arith.constant dense<0.000000e+00> : vector<8x256xf32>
    %74 = tpu.matmul %73, %13, %cst_22 {dimension_numbers = #tpu.dot_dimension_numbers<[1], [0], [0], [1], [0, 0, 1, 1], [], []>} : vector<8x64xbf16>, vector<64x256xbf16>, vector<8x256xf32> -> vector<8x256xf32>
    %75 = vector.extract_strided_slice %12 {offsets = [8, 0], sizes = [8, 128], strides = [1, 1]} : vector<64x256xf32> to vector<8x128xf32>
    %76 = vector.extract_strided_slice %12 {offsets = [48, 128], sizes = [8, 128], strides = [1, 1]} : vector<64x256xf32> to vector<8x128xf32>
    %77 = tpu.concatenate %75, %76 in 1 : vector<8x128xf32>, vector<8x128xf32> -> vector<8x256xf32>
    %78 = arith.addf %77, %74 : vector<8x256xf32>
    %79 = arith.mulf %78, %38 : vector<8x256xf32>
    %80 = math.tanh %79 : vector<8x256xf32>
    %81 = arith.mulf %80, %38 : vector<8x256xf32>
    %82 = arith.addf %81, %41 : vector<8x256xf32>
    %83 = vector.extract_strided_slice %82 {offsets = [0, 0], sizes = [8, 32], strides = [1, 1]} : vector<8x256xf32> to vector<8x32xf32>
    %84 = vector.extract_strided_slice %82 {offsets = [0, 32], sizes = [8, 32], strides = [1, 1]} : vector<8x256xf32> to vector<8x32xf32>
    %85 = vector.extract_strided_slice %82 {offsets = [0, 64], sizes = [8, 32], strides = [1, 1]} : vector<8x256xf32> to vector<8x32xf32>
    %86 = vector.extract_strided_slice %82 {offsets = [0, 96], sizes = [8, 32], strides = [1, 1]} : vector<8x256xf32> to vector<8x32xf32>
    %87 = vector.extract_strided_slice %82 {offsets = [0, 128], sizes = [8, 32], strides = [1, 1]} : vector<8x256xf32> to vector<8x32xf32>
    %88 = vector.extract_strided_slice %82 {offsets = [0, 160], sizes = [8, 32], strides = [1, 1]} : vector<8x256xf32> to vector<8x32xf32>
    %89 = vector.extract_strided_slice %82 {offsets = [0, 192], sizes = [8, 32], strides = [1, 1]} : vector<8x256xf32> to vector<8x32xf32>
    %90 = vector.extract_strided_slice %82 {offsets = [0, 224], sizes = [8, 32], strides = [1, 1]} : vector<8x256xf32> to vector<8x32xf32>
    %91 = arith.mulf %84, %64 : vector<8x32xf32>
    %92 = arith.mulf %83, %85 : vector<8x32xf32>
    %93 = arith.addf %91, %92 : vector<8x32xf32>
    %94 = arith.mulf %88, %67 : vector<8x32xf32>
    %95 = arith.mulf %87, %89 : vector<8x32xf32>
    %96 = arith.addf %94, %95 : vector<8x32xf32>
    %97 = math.tanh %93 : vector<8x32xf32>
    %98 = arith.mulf %86, %97 : vector<8x32xf32>
    %99 = math.tanh %96 : vector<8x32xf32>
    %100 = arith.mulf %90, %99 : vector<8x32xf32>
    %101 = tpu.concatenate %98, %100 in 1 : vector<8x32xf32>, vector<8x32xf32> -> vector<8x64xf32>
    %102 = arith.truncf %101 : vector<8x64xf32> to vector<8x64xbf16>
    %cst_23 = arith.constant dense<0.000000e+00> : vector<8x256xf32>
    %103 = tpu.matmul %102, %13, %cst_23 {dimension_numbers = #tpu.dot_dimension_numbers<[1], [0], [0], [1], [0, 0, 1, 1], [], []>} : vector<8x64xbf16>, vector<64x256xbf16>, vector<8x256xf32> -> vector<8x256xf32>
    %104 = vector.extract_strided_slice %12 {offsets = [16, 0], sizes = [8, 128], strides = [1, 1]} : vector<64x256xf32> to vector<8x128xf32>
    %105 = vector.extract_strided_slice %12 {offsets = [40, 128], sizes = [8, 128], strides = [1, 1]} : vector<64x256xf32> to vector<8x128xf32>
    %106 = tpu.concatenate %104, %105 in 1 : vector<8x128xf32>, vector<8x128xf32> -> vector<8x256xf32>
    %107 = arith.addf %106, %103 : vector<8x256xf32>
    %108 = arith.mulf %107, %38 : vector<8x256xf32>
    %109 = math.tanh %108 : vector<8x256xf32>
    %110 = arith.mulf %109, %38 : vector<8x256xf32>
    %111 = arith.addf %110, %41 : vector<8x256xf32>
    %112 = vector.extract_strided_slice %111 {offsets = [0, 0], sizes = [8, 32], strides = [1, 1]} : vector<8x256xf32> to vector<8x32xf32>
    %113 = vector.extract_strided_slice %111 {offsets = [0, 32], sizes = [8, 32], strides = [1, 1]} : vector<8x256xf32> to vector<8x32xf32>
    %114 = vector.extract_strided_slice %111 {offsets = [0, 64], sizes = [8, 32], strides = [1, 1]} : vector<8x256xf32> to vector<8x32xf32>
    %115 = vector.extract_strided_slice %111 {offsets = [0, 96], sizes = [8, 32], strides = [1, 1]} : vector<8x256xf32> to vector<8x32xf32>
    %116 = vector.extract_strided_slice %111 {offsets = [0, 128], sizes = [8, 32], strides = [1, 1]} : vector<8x256xf32> to vector<8x32xf32>
    %117 = vector.extract_strided_slice %111 {offsets = [0, 160], sizes = [8, 32], strides = [1, 1]} : vector<8x256xf32> to vector<8x32xf32>
    %118 = vector.extract_strided_slice %111 {offsets = [0, 192], sizes = [8, 32], strides = [1, 1]} : vector<8x256xf32> to vector<8x32xf32>
    %119 = vector.extract_strided_slice %111 {offsets = [0, 224], sizes = [8, 32], strides = [1, 1]} : vector<8x256xf32> to vector<8x32xf32>
    %120 = arith.mulf %113, %93 : vector<8x32xf32>
    %121 = arith.mulf %112, %114 : vector<8x32xf32>
    %122 = arith.addf %120, %121 : vector<8x32xf32>
    %123 = arith.mulf %117, %96 : vector<8x32xf32>
    %124 = arith.mulf %116, %118 : vector<8x32xf32>
    %125 = arith.addf %123, %124 : vector<8x32xf32>
    %126 = math.tanh %122 : vector<8x32xf32>
    %127 = arith.mulf %115, %126 : vector<8x32xf32>
    %128 = math.tanh %125 : vector<8x32xf32>
    %129 = arith.mulf %119, %128 : vector<8x32xf32>
    %130 = tpu.concatenate %127, %129 in 1 : vector<8x32xf32>, vector<8x32xf32> -> vector<8x64xf32>
    %131 = arith.truncf %130 : vector<8x64xf32> to vector<8x64xbf16>
    %cst_24 = arith.constant dense<0.000000e+00> : vector<8x256xf32>
    %132 = tpu.matmul %131, %13, %cst_24 {dimension_numbers = #tpu.dot_dimension_numbers<[1], [0], [0], [1], [0, 0, 1, 1], [], []>} : vector<8x64xbf16>, vector<64x256xbf16>, vector<8x256xf32> -> vector<8x256xf32>
    %133 = vector.extract_strided_slice %12 {offsets = [24, 0], sizes = [8, 128], strides = [1, 1]} : vector<64x256xf32> to vector<8x128xf32>
    %134 = vector.extract_strided_slice %12 {offsets = [32, 128], sizes = [8, 128], strides = [1, 1]} : vector<64x256xf32> to vector<8x128xf32>
    %135 = tpu.concatenate %133, %134 in 1 : vector<8x128xf32>, vector<8x128xf32> -> vector<8x256xf32>
    %136 = arith.addf %135, %132 : vector<8x256xf32>
    %137 = arith.mulf %136, %38 : vector<8x256xf32>
    %138 = math.tanh %137 : vector<8x256xf32>
    %139 = arith.mulf %138, %38 : vector<8x256xf32>
    %140 = arith.addf %139, %41 : vector<8x256xf32>
    %141 = vector.extract_strided_slice %140 {offsets = [0, 0], sizes = [8, 32], strides = [1, 1]} : vector<8x256xf32> to vector<8x32xf32>
    %142 = vector.extract_strided_slice %140 {offsets = [0, 32], sizes = [8, 32], strides = [1, 1]} : vector<8x256xf32> to vector<8x32xf32>
    %143 = vector.extract_strided_slice %140 {offsets = [0, 64], sizes = [8, 32], strides = [1, 1]} : vector<8x256xf32> to vector<8x32xf32>
    %144 = vector.extract_strided_slice %140 {offsets = [0, 96], sizes = [8, 32], strides = [1, 1]} : vector<8x256xf32> to vector<8x32xf32>
    %145 = vector.extract_strided_slice %140 {offsets = [0, 128], sizes = [8, 32], strides = [1, 1]} : vector<8x256xf32> to vector<8x32xf32>
    %146 = vector.extract_strided_slice %140 {offsets = [0, 160], sizes = [8, 32], strides = [1, 1]} : vector<8x256xf32> to vector<8x32xf32>
    %147 = vector.extract_strided_slice %140 {offsets = [0, 192], sizes = [8, 32], strides = [1, 1]} : vector<8x256xf32> to vector<8x32xf32>
    %148 = vector.extract_strided_slice %140 {offsets = [0, 224], sizes = [8, 32], strides = [1, 1]} : vector<8x256xf32> to vector<8x32xf32>
    %149 = arith.mulf %142, %122 : vector<8x32xf32>
    %150 = arith.mulf %141, %143 : vector<8x32xf32>
    %151 = arith.addf %149, %150 : vector<8x32xf32>
    %152 = arith.mulf %146, %125 : vector<8x32xf32>
    %153 = arith.mulf %145, %147 : vector<8x32xf32>
    %154 = arith.addf %152, %153 : vector<8x32xf32>
    %155 = math.tanh %151 : vector<8x32xf32>
    %156 = arith.mulf %144, %155 : vector<8x32xf32>
    %157 = math.tanh %154 : vector<8x32xf32>
    %158 = arith.mulf %148, %157 : vector<8x32xf32>
    %159 = tpu.concatenate %156, %158 in 1 : vector<8x32xf32>, vector<8x32xf32> -> vector<8x64xf32>
    %160 = arith.truncf %159 : vector<8x64xf32> to vector<8x64xbf16>
    %cst_25 = arith.constant dense<0.000000e+00> : vector<8x256xf32>
    %161 = tpu.matmul %160, %13, %cst_25 {dimension_numbers = #tpu.dot_dimension_numbers<[1], [0], [0], [1], [0, 0, 1, 1], [], []>} : vector<8x64xbf16>, vector<64x256xbf16>, vector<8x256xf32> -> vector<8x256xf32>
    %162 = vector.extract_strided_slice %12 {offsets = [32, 0], sizes = [8, 128], strides = [1, 1]} : vector<64x256xf32> to vector<8x128xf32>
    %163 = vector.extract_strided_slice %12 {offsets = [24, 128], sizes = [8, 128], strides = [1, 1]} : vector<64x256xf32> to vector<8x128xf32>
    %164 = tpu.concatenate %162, %163 in 1 : vector<8x128xf32>, vector<8x128xf32> -> vector<8x256xf32>
    %165 = arith.addf %164, %161 : vector<8x256xf32>
    %166 = arith.mulf %165, %38 : vector<8x256xf32>
    %167 = math.tanh %166 : vector<8x256xf32>
    %168 = arith.mulf %167, %38 : vector<8x256xf32>
    %169 = arith.addf %168, %41 : vector<8x256xf32>
    %170 = vector.extract_strided_slice %169 {offsets = [0, 0], sizes = [8, 32], strides = [1, 1]} : vector<8x256xf32> to vector<8x32xf32>
    %171 = vector.extract_strided_slice %169 {offsets = [0, 32], sizes = [8, 32], strides = [1, 1]} : vector<8x256xf32> to vector<8x32xf32>
    %172 = vector.extract_strided_slice %169 {offsets = [0, 64], sizes = [8, 32], strides = [1, 1]} : vector<8x256xf32> to vector<8x32xf32>
    %173 = vector.extract_strided_slice %169 {offsets = [0, 96], sizes = [8, 32], strides = [1, 1]} : vector<8x256xf32> to vector<8x32xf32>
    %174 = vector.extract_strided_slice %169 {offsets = [0, 128], sizes = [8, 32], strides = [1, 1]} : vector<8x256xf32> to vector<8x32xf32>
    %175 = vector.extract_strided_slice %169 {offsets = [0, 160], sizes = [8, 32], strides = [1, 1]} : vector<8x256xf32> to vector<8x32xf32>
    %176 = vector.extract_strided_slice %169 {offsets = [0, 192], sizes = [8, 32], strides = [1, 1]} : vector<8x256xf32> to vector<8x32xf32>
    %177 = vector.extract_strided_slice %169 {offsets = [0, 224], sizes = [8, 32], strides = [1, 1]} : vector<8x256xf32> to vector<8x32xf32>
    %178 = arith.mulf %171, %151 : vector<8x32xf32>
    %179 = arith.mulf %170, %172 : vector<8x32xf32>
    %180 = arith.addf %178, %179 : vector<8x32xf32>
    %181 = arith.mulf %175, %154 : vector<8x32xf32>
    %182 = arith.mulf %174, %176 : vector<8x32xf32>
    %183 = arith.addf %181, %182 : vector<8x32xf32>
    %184 = math.tanh %180 : vector<8x32xf32>
    %185 = arith.mulf %173, %184 : vector<8x32xf32>
    %186 = math.tanh %183 : vector<8x32xf32>
    %187 = arith.mulf %177, %186 : vector<8x32xf32>
    %188 = tpu.concatenate %185, %187 in 1 : vector<8x32xf32>, vector<8x32xf32> -> vector<8x64xf32>
    %189 = arith.truncf %188 : vector<8x64xf32> to vector<8x64xbf16>
    %cst_26 = arith.constant dense<0.000000e+00> : vector<8x256xf32>
    %190 = tpu.matmul %189, %13, %cst_26 {dimension_numbers = #tpu.dot_dimension_numbers<[1], [0], [0], [1], [0, 0, 1, 1], [], []>} : vector<8x64xbf16>, vector<64x256xbf16>, vector<8x256xf32> -> vector<8x256xf32>
    %191 = vector.extract_strided_slice %12 {offsets = [40, 0], sizes = [8, 128], strides = [1, 1]} : vector<64x256xf32> to vector<8x128xf32>
    %192 = vector.extract_strided_slice %12 {offsets = [16, 128], sizes = [8, 128], strides = [1, 1]} : vector<64x256xf32> to vector<8x128xf32>
    %193 = tpu.concatenate %191, %192 in 1 : vector<8x128xf32>, vector<8x128xf32> -> vector<8x256xf32>
    %194 = arith.addf %193, %190 : vector<8x256xf32>
    %195 = arith.mulf %194, %38 : vector<8x256xf32>
    %196 = math.tanh %195 : vector<8x256xf32>
    %197 = arith.mulf %196, %38 : vector<8x256xf32>
    %198 = arith.addf %197, %41 : vector<8x256xf32>
    %199 = vector.extract_strided_slice %198 {offsets = [0, 0], sizes = [8, 32], strides = [1, 1]} : vector<8x256xf32> to vector<8x32xf32>
    %200 = vector.extract_strided_slice %198 {offsets = [0, 32], sizes = [8, 32], strides = [1, 1]} : vector<8x256xf32> to vector<8x32xf32>
    %201 = vector.extract_strided_slice %198 {offsets = [0, 64], sizes = [8, 32], strides = [1, 1]} : vector<8x256xf32> to vector<8x32xf32>
    %202 = vector.extract_strided_slice %198 {offsets = [0, 96], sizes = [8, 32], strides = [1, 1]} : vector<8x256xf32> to vector<8x32xf32>
    %203 = vector.extract_strided_slice %198 {offsets = [0, 128], sizes = [8, 32], strides = [1, 1]} : vector<8x256xf32> to vector<8x32xf32>
    %204 = vector.extract_strided_slice %198 {offsets = [0, 160], sizes = [8, 32], strides = [1, 1]} : vector<8x256xf32> to vector<8x32xf32>
    %205 = vector.extract_strided_slice %198 {offsets = [0, 192], sizes = [8, 32], strides = [1, 1]} : vector<8x256xf32> to vector<8x32xf32>
    %206 = vector.extract_strided_slice %198 {offsets = [0, 224], sizes = [8, 32], strides = [1, 1]} : vector<8x256xf32> to vector<8x32xf32>
    %207 = arith.mulf %200, %180 : vector<8x32xf32>
    %208 = arith.mulf %199, %201 : vector<8x32xf32>
    %209 = arith.addf %207, %208 : vector<8x32xf32>
    %210 = arith.mulf %204, %183 : vector<8x32xf32>
    %211 = arith.mulf %203, %205 : vector<8x32xf32>
    %212 = arith.addf %210, %211 : vector<8x32xf32>
    %213 = math.tanh %209 : vector<8x32xf32>
    %214 = arith.mulf %202, %213 : vector<8x32xf32>
    %215 = math.tanh %212 : vector<8x32xf32>
    %216 = arith.mulf %206, %215 : vector<8x32xf32>
    %217 = tpu.concatenate %214, %216 in 1 : vector<8x32xf32>, vector<8x32xf32> -> vector<8x64xf32>
    %218 = arith.truncf %217 : vector<8x64xf32> to vector<8x64xbf16>
    %cst_27 = arith.constant dense<0.000000e+00> : vector<8x256xf32>
    %219 = tpu.matmul %218, %13, %cst_27 {dimension_numbers = #tpu.dot_dimension_numbers<[1], [0], [0], [1], [0, 0, 1, 1], [], []>} : vector<8x64xbf16>, vector<64x256xbf16>, vector<8x256xf32> -> vector<8x256xf32>
    %220 = vector.extract_strided_slice %12 {offsets = [48, 0], sizes = [8, 128], strides = [1, 1]} : vector<64x256xf32> to vector<8x128xf32>
    %221 = vector.extract_strided_slice %12 {offsets = [8, 128], sizes = [8, 128], strides = [1, 1]} : vector<64x256xf32> to vector<8x128xf32>
    %222 = tpu.concatenate %220, %221 in 1 : vector<8x128xf32>, vector<8x128xf32> -> vector<8x256xf32>
    %223 = arith.addf %222, %219 : vector<8x256xf32>
    %224 = arith.mulf %223, %38 : vector<8x256xf32>
    %225 = math.tanh %224 : vector<8x256xf32>
    %226 = arith.mulf %225, %38 : vector<8x256xf32>
    %227 = arith.addf %226, %41 : vector<8x256xf32>
    %228 = vector.extract_strided_slice %227 {offsets = [0, 0], sizes = [8, 32], strides = [1, 1]} : vector<8x256xf32> to vector<8x32xf32>
    %229 = vector.extract_strided_slice %227 {offsets = [0, 32], sizes = [8, 32], strides = [1, 1]} : vector<8x256xf32> to vector<8x32xf32>
    %230 = vector.extract_strided_slice %227 {offsets = [0, 64], sizes = [8, 32], strides = [1, 1]} : vector<8x256xf32> to vector<8x32xf32>
    %231 = vector.extract_strided_slice %227 {offsets = [0, 96], sizes = [8, 32], strides = [1, 1]} : vector<8x256xf32> to vector<8x32xf32>
    %232 = vector.extract_strided_slice %227 {offsets = [0, 128], sizes = [8, 32], strides = [1, 1]} : vector<8x256xf32> to vector<8x32xf32>
    %233 = vector.extract_strided_slice %227 {offsets = [0, 160], sizes = [8, 32], strides = [1, 1]} : vector<8x256xf32> to vector<8x32xf32>
    %234 = vector.extract_strided_slice %227 {offsets = [0, 192], sizes = [8, 32], strides = [1, 1]} : vector<8x256xf32> to vector<8x32xf32>
    %235 = vector.extract_strided_slice %227 {offsets = [0, 224], sizes = [8, 32], strides = [1, 1]} : vector<8x256xf32> to vector<8x32xf32>
    %236 = arith.mulf %229, %209 : vector<8x32xf32>
    %237 = arith.mulf %228, %230 : vector<8x32xf32>
    %238 = arith.addf %236, %237 : vector<8x32xf32>
    %239 = arith.mulf %233, %212 : vector<8x32xf32>
    %240 = arith.mulf %232, %234 : vector<8x32xf32>
    %241 = arith.addf %239, %240 : vector<8x32xf32>
    %242 = math.tanh %238 : vector<8x32xf32>
    %243 = arith.mulf %231, %242 : vector<8x32xf32>
    %244 = math.tanh %241 : vector<8x32xf32>
    %245 = arith.mulf %235, %244 : vector<8x32xf32>
    %246 = tpu.concatenate %243, %245 in 1 : vector<8x32xf32>, vector<8x32xf32> -> vector<8x64xf32>
    %247 = arith.truncf %246 : vector<8x64xf32> to vector<8x64xbf16>
    %cst_28 = arith.constant dense<0.000000e+00> : vector<8x256xf32>
    %248 = tpu.matmul %247, %13, %cst_28 {dimension_numbers = #tpu.dot_dimension_numbers<[1], [0], [0], [1], [0, 0, 1, 1], [], []>} : vector<8x64xbf16>, vector<64x256xbf16>, vector<8x256xf32> -> vector<8x256xf32>
    %249 = vector.extract_strided_slice %12 {offsets = [56, 0], sizes = [8, 128], strides = [1, 1]} : vector<64x256xf32> to vector<8x128xf32>
    %250 = vector.extract_strided_slice %12 {offsets = [0, 128], sizes = [8, 128], strides = [1, 1]} : vector<64x256xf32> to vector<8x128xf32>
    %251 = tpu.concatenate %249, %250 in 1 : vector<8x128xf32>, vector<8x128xf32> -> vector<8x256xf32>
    %252 = arith.addf %251, %248 : vector<8x256xf32>
    %253 = arith.mulf %252, %38 : vector<8x256xf32>
    %254 = math.tanh %253 : vector<8x256xf32>
    %255 = arith.mulf %254, %38 : vector<8x256xf32>
    %256 = arith.addf %255, %41 : vector<8x256xf32>
    %257 = vector.extract_strided_slice %256 {offsets = [0, 0], sizes = [8, 32], strides = [1, 1]} : vector<8x256xf32> to vector<8x32xf32>
    %258 = vector.extract_strided_slice %256 {offsets = [0, 32], sizes = [8, 32], strides = [1, 1]} : vector<8x256xf32> to vector<8x32xf32>
    %259 = vector.extract_strided_slice %256 {offsets = [0, 64], sizes = [8, 32], strides = [1, 1]} : vector<8x256xf32> to vector<8x32xf32>
    %260 = vector.extract_strided_slice %256 {offsets = [0, 96], sizes = [8, 32], strides = [1, 1]} : vector<8x256xf32> to vector<8x32xf32>
    %261 = vector.extract_strided_slice %256 {offsets = [0, 128], sizes = [8, 32], strides = [1, 1]} : vector<8x256xf32> to vector<8x32xf32>
    %262 = vector.extract_strided_slice %256 {offsets = [0, 160], sizes = [8, 32], strides = [1, 1]} : vector<8x256xf32> to vector<8x32xf32>
    %263 = vector.extract_strided_slice %256 {offsets = [0, 192], sizes = [8, 32], strides = [1, 1]} : vector<8x256xf32> to vector<8x32xf32>
    %264 = vector.extract_strided_slice %256 {offsets = [0, 224], sizes = [8, 32], strides = [1, 1]} : vector<8x256xf32> to vector<8x32xf32>
    %265 = arith.mulf %258, %238 : vector<8x32xf32>
    %266 = arith.mulf %257, %259 : vector<8x32xf32>
    %267 = arith.addf %265, %266 : vector<8x32xf32>
    %268 = arith.mulf %262, %241 : vector<8x32xf32>
    %269 = arith.mulf %261, %263 : vector<8x32xf32>
    %270 = arith.addf %268, %269 : vector<8x32xf32>
    %271 = math.tanh %267 : vector<8x32xf32>
    %272 = arith.mulf %260, %271 : vector<8x32xf32>
    %273 = math.tanh %270 : vector<8x32xf32>
    %274 = arith.mulf %264, %273 : vector<8x32xf32>
    %275 = tpu.concatenate %272, %274 in 1 : vector<8x32xf32>, vector<8x32xf32> -> vector<8x64xf32>
    %276 = vector.extract_strided_slice %275 {offsets = [0, 0], sizes = [8, 32], strides = [1, 1]} : vector<8x64xf32> to vector<8x32xf32>
    %277 = vector.extract_strided_slice %275 {offsets = [0, 32], sizes = [8, 32], strides = [1, 1]} : vector<8x64xf32> to vector<8x32xf32>
    %cst_29 = arith.constant 5.000000e-01 : f32
    %278 = vector.broadcast %cst_29 : f32 to vector<8x32xf32>
    %279 = arith.mulf %278, %277 : vector<8x32xf32>
    %280 = arith.addf %276, %279 : vector<8x32xf32>
    %281 = arith.truncf %280 : vector<8x32xf32> to vector<8x32xbf16>
    %c0_30 = arith.constant 0 : index
    %c0_31 = arith.constant 0 : index
    %282 = vector.load %arg6[%c0_30, %c0_31] : memref<32x18xbf16, #tpu.memory_space<vmem>>, vector<32x18xbf16>
    %cst_32 = arith.constant dense<0.000000e+00> : vector<8x18xf32>
    %283 = tpu.matmul %281, %282, %cst_32 {dimension_numbers = #tpu.dot_dimension_numbers<[1], [0], [0], [1], [0, 0, 1, 1], [], []>} : vector<8x32xbf16>, vector<32x18xbf16>, vector<8x18xf32> -> vector<8x18xf32>
    %c0_33 = arith.constant 0 : index
    %c0_34 = arith.constant 0 : index
    %284 = vector.load %arg7[%c0_33, %c0_34] : memref<1x18xf32, #tpu.memory_space<vmem>>, vector<1x18xf32>
    %285 = vector.broadcast %284 : vector<1x18xf32> to vector<8x18xf32>
    %286 = arith.addf %283, %285 : vector<8x18xf32>
    %287 = vector.extract_strided_slice %286 {offsets = [0, 0], sizes = [8, 10], strides = [1, 1]} : vector<8x18xf32> to vector<8x10xf32>
    %cst_35 = arith.constant dense<0xFF800000> : vector<8xf32>
    %288 = vector.multi_reduction <maximumf>, %287, %cst_35 [1] : vector<8x10xf32> to vector<8xf32>
    %289 = vector.shape_cast %288 : vector<8xf32> to vector<8x1xf32>
    %290 = vector.broadcast %289 : vector<8x1xf32> to vector<8x10xf32>
    %291 = arith.subf %287, %290 : vector<8x10xf32>
    %292 = math.exp %291 : vector<8x10xf32>
    %cst_36 = arith.constant dense<0.000000e+00> : vector<8xf32>
    %293 = vector.multi_reduction <add>, %292, %cst_36 [1] : vector<8x10xf32> to vector<8xf32>
    %294 = vector.shape_cast %293 : vector<8xf32> to vector<8x1xf32>
    %295 = vector.broadcast %294 : vector<8x1xf32> to vector<8x10xf32>
    %296 = arith.divf %292, %295 : vector<8x10xf32>
    %297 = vector.extract_strided_slice %286 {offsets = [0, 10], sizes = [8, 8], strides = [1, 1]} : vector<8x18xf32> to vector<8x8xf32>
    %298 = tpu.concatenate %296, %297 in 1 : vector<8x10xf32>, vector<8x8xf32> -> vector<8x18xf32>
    %c0_37 = arith.constant 0 : index
    %c0_38 = arith.constant 0 : index
    %299 = vector.load %arg8[%c0_37, %c0_38] : memref<8x18xf32, #tpu.memory_space<vmem>>, vector<8x18xf32>
    tpu.vector_store %arg8[%c0_37, %c0_38], %298 {strides = array<i32>} : memref<8x18xf32, #tpu.memory_space<vmem>>, vector<8x18xf32>,
    return
  }
}

</mosaic_0001>

<bundles_post_ra>
// kernel: tpu_custom_call.1
= control target key start
LH: loop header
LB: loop body
LE: loop exit
PB: predicated region body
PF: predicated region fallthrough
CT: control target
= control target key end

     0   :  { %13 = vsyncpa [#allocation3], 0  ;;  %s1730_s0 = inlined_call_operand.vmem [shape: bf16[64,16], index: 0, kind: input, shape index: {}]   ;;  %s1731_s1 = inlined_call_operand.vmem [shape: bf16[16,16], index: 1, kind: input, shape index: {}]   ;;  %s1732_s2 = inlined_call_operand.vmem [shape: f32[1,16], index: 2, kind: input, shape index: {}]   ;;  %s1733_s3 = inlined_call_operand.vmem [shape: bf16[16,256], index: 3, kind: input, shape index: {}]   ;;  %s1734_s4 = inlined_call_operand.vmem [shape: f32[1,256], index: 4, kind: input, shape index: {}]   ;;  %s1735_s5 = inlined_call_operand.hbm [shape: bf16[64,256], index: 5, kind: input, shape index: {}]   ;;  %s1736_s6 = inlined_call_operand.vmem [shape: bf16[32,18], index: 6, kind: input, shape index: {}]   ;;  %s1737_s7 = inlined_call_operand.vmem [shape: f32[1,18], index: 7, kind: input, shape index: {}]   ;;  %s1738_s8 = inlined_call_operand.hbm [shape: f32[8,18], index: 8, kind: output, shape index: {}]  }
   0x1   :  { %14 = vsyncpa [#allocation4], 0  ;;  %s29_s29 = sshll.u32 %s1735_s5, 4  ;;  %s1326_s30 = smov [#allocation2]   ;;  %s30_s29 = int_to_ptr.hbm [resolvable:$true] %s29_s29 }
   0x2   :  { %s31_s9 = sshll.u32 %s1326_s30, 4  ;;  %s1327_s10 = smov 128   ;;  %s32_s9 = int_to_ptr.vmem [resolvable:$true] %s31_s9 }
   0x3   :  { %s1328_s11 = smov 8  }
   0x4   :  { %37 = dma.hbm_to_vmem [thread:$0]  %s30_s29, 1024, %s32_s9, [#allocation3], %s1327_s10, %s1327_s10, %s1328_s11  }
   0x5   :  { %1322 = dma.done.wait [#allocation3], 1024  }
   0x6   :  { %1323 = vsyncadd [#allocation3], 4294966272  ;;  %v1166_v0 = vld [vmem:[%s1731_s1] sm:$0xff]  ;;  %vm87_vm0 = vcmask 130048   ;;  %v1163_v2 = vld [vmem:[%s1730_s0 + $0x8] sm:$0xff]  ;;  %v1329_v22 = vmov 0  }
   0x7   :  { %v1162_v1 = vld [vmem:[%s1730_s0] sm:$0xff]  ;;  %107 = vmatpush.bf16.msra.mxu0 %v1166_v0  ;;  %v1164_v3 = vld [vmem:[%s1730_s0 + $0x10] sm:$0xff]  ;;  %v1165_v4 = vld [vmem:[%s1730_s0 + $0x18] sm:$0xff]  ;;  %s1332_s29 = smov 32   ;;  %vm396_vm7 = vcmask 261120   ;;  %vm314_vm8 = vcmask 523264  }
   0x8   :  { %v1133_v5 = vld [vmem:[#allocation2 + $0x30] sm:$0xf]  ;;  %v1176_v6 = vld [vmem:[#allocation2 + $0x34] sm:$0xf0]  ;;  %v1125_v8 = vld [vmem:[#allocation2 + $0x20] sm:$0xf] }
   0x9   :  { %v1402_v7 = vor.u32 %v1176_v6, %v1133_v5  ;;  %v1174_v9 = vld [vmem:[#allocation2 + $0x24] sm:$0xf0]  ;;  %v1117_v11 = vld [vmem:[#allocation2 + $0x10] sm:$0xf]  ;;  %v1172_v12 = vld [vmem:[#allocation2 + $0x14] sm:$0xf0] }
   0xa   :  { %1087 = vmatmul.msk.bf16.vlgmr.msra.gmra.mxu0 %vm87_vm0, %v1162_v1  ;;  %v1406_v10 = vor.u32 %v1174_v9, %v1125_v8  ;;  %v1410_v13 = vor.u32 %v1172_v12, %v1117_v11  ;;  %v1109_v14 = vld [vmem:[#allocation2] sm:$0xf]  ;;  %v1170_v15 = vld [vmem:[#allocation2 + $0x4] sm:$0xf0]  ;;  %v1167_v19 = vld [vmem:[%s1733_s3 + $0x4] sm:$0xf] }
   0xb   :  { %322 = vmatpush.bf16.msra.mxu3 %v1402_v7  ;;  %489 = vmatpush.bf16.msrb.mxu0 %v1402_v7  ;;  %v1414_v16 = vor.u32 %v1170_v15, %v1109_v14  ;;  %v1093_v17 = vld [vmem:[%s1733_s3] sm:$0xf]  ;;  %v1168_v18 = vld [vmem:[%s1733_s3 + $0x4] sm:$0xf0]  ;;  %v1095_v21 = vld [vmem:[%s1733_s3 + $0x8] sm:$0xf0] }
   0xc   :  { %v1094_v20 = vor.u32 %v1168_v18, %v1093_v17  ;;  %v1098_v23 = vor.u32 %v1167_v19, %v1095_v21  ;;  %v1442_v25 = vld [vmem:[%s1732_s2] ss:$0 sm:$0xff]  ;;  %v1175_v33 = vld [vmem:[#allocation2 + $0x34] sm:$0xf]  ;;  %v1135_v34 = vld [vmem:[#allocation2 + $0x38] sm:$0xf0] }
   0xd   :  { %v1448_v35 = vor.u32 %v1175_v33, %v1135_v34  ;;  %v1173_v38 = vld [vmem:[#allocation2 + $0x24] sm:$0xf]  ;;  %v1127_v39 = vld [vmem:[#allocation2 + $0x28] sm:$0xf0]  ;;  %v1171_v42 = vld [vmem:[#allocation2 + $0x14] sm:$0xf] }
   0xe   :  { %178 = vmatpush.bf16.msra.mxu1 %v1094_v20  ;;  %207 = vmatpush.bf16.msra.mxu2 %v1098_v23  ;;  %v1455_v41 = vor.u32 %v1173_v38, %v1127_v39  ;;  %v1119_v43 = vld [vmem:[#allocation2 + $0x18] sm:$0xf0]  ;;  %v1169_v45 = vld [vmem:[#allocation2 + $0x4] sm:$0xf]  ;;  %v1111_v46 = vld [vmem:[#allocation2 + $0x8] sm:$0xf0] }
   0xf   :  { %323 = vmatpush.bf16.msra.mxu3 %v1406_v10  ;;  %490 = vmatpush.bf16.msrb.mxu0 %v1406_v10  ;;  %v1460_v44 = vor.u32 %v1171_v42, %v1119_v43  ;;  %v1464_v47 = vor.u32 %v1169_v45, %v1111_v46  ;;  %v143_v5 = vld [vmem:[%s1734_s4] sm:$0x3]  ;;  %v1330_v11 = vmov 0.5   ;;  %s1331_s4 = smov 64   ;;  %s1333_s12 = smov 96   ;;  %vm1022_vm9 = vcmask 80896  }
  0x10   :  { %v1496_v6 = vperm.slane %v143_v5, 0  ;;  %v146_v15 = vperm.slane %v143_v5, 1  ;;  %s1057_s16 = sshll.u32 %s1738_s8, 4  ;;  %vm1048_vm14 = vcmask 146432   ;;  %s1058_s16 = int_to_ptr.hbm [resolvable:$true] %s1057_s16 }
  0x12   :  { %572 = vmatpush.bf16.msrb.mxu2 %v1402_v7  ;;  %502 = vmatpush.bf16.msrb.mxu1 %v1448_v35 }
  0x13   :  { %324 = vmatpush.bf16.msra.mxu3 %v1410_v13  ;;  %491 = vmatpush.bf16.msrb.mxu0 %v1410_v13 }
  0x16   :  { %573 = vmatpush.bf16.msrb.mxu2 %v1406_v10  ;;  %503 = vmatpush.bf16.msrb.mxu1 %v1455_v41 }
  0x17   :  { %325 = vmatpush.bf16.msra.mxu3 %v1414_v16  ;;  %492 = vmatpush.bf16.msrb.mxu0 %v1414_v16 }
  0x1a   :  { %1088 = vmatmul.msk.bf16.gmra.mxu0 %vm87_vm0, %v1163_v2  ;;  %326 = vmatmul.bf16.vlgmr.msra.gmra.mxu3 %v1329_v22 }
  0x1b   :  { %655 = vmatpush.bf16.msra.mxu0 %v1402_v7  ;;  %574 = vmatpush.bf16.msrb.mxu2 %v1410_v13 }
  0x1c   :  { %335 = vmatpush.bf16.msrb.mxu3 %v1448_v35  ;;  %504 = vmatpush.bf16.msrb.mxu1 %v1460_v44 }
  0x1f   :  { %656 = vmatpush.bf16.msra.mxu0 %v1406_v10  ;;  %575 = vmatpush.bf16.msrb.mxu2 %v1414_v16 }
  0x20   :  { %336 = vmatpush.bf16.msrb.mxu3 %v1455_v41  ;;  %505 = vmatpush.bf16.msrb.mxu1 %v1464_v47 }
  0x23   :  { %657 = vmatpush.bf16.msra.mxu0 %v1410_v13 }
  0x24   :  { %337 = vmatpush.bf16.msrb.mxu3 %v1460_v44 }
  0x27   :  { %658 = vmatpush.bf16.msra.mxu0 %v1414_v16 }
  0x28   :  { %338 = vmatpush.bf16.msrb.mxu3 %v1464_v47 }
  0x2a   :  { %1089 = vmatmul.msk.bf16.gmra.mxu0 %vm87_vm0, %v1164_v3  ;;  %v237_v3 = vlaneseq }
  0x2b   :  { %339 = vmatmul.bf16.vlgmr.msrb.gmra.mxu3 %v1329_v22 }
  0x2c   :  { %406 = vmatpush.bf16.msra.mxu3 %v1402_v7 }
  0x30   :  { %407 = vmatpush.bf16.msra.mxu3 %v1406_v10 }
  0x34   :  { %408 = vmatpush.bf16.msra.mxu3 %v1410_v13 }
  0x38   :  { %409 = vmatpush.bf16.msra.mxu3 %v1414_v16 }
  0x3a   :  { %1090 = vmatmul.msk.bf16.gmra.mxu0 %vm87_vm0, %v1165_v4  ;;  %v238_v4 = vand.u32 127, %v237_v3 }
  0x3c   :  { %419 = vmatpush.bf16.msrb.mxu3 %v1448_v35  ;;  %vm264_vm1 = vcmp.ge.s32.totalorder %v238_v4, 64  ;;  %vm266_vm2 = vcmp.lt.s32.totalorder %v238_v4, 96 }
  0x3d   :  { %vm268_vm3 = vmand %vm264_vm1, %vm266_vm2 }
  0x3e   :  { %v1499_v12 = vsel %vm268_vm3, 1.0, %v1330_v11  ;;  %v1506_v22 = vsel %vm268_vm3, 0.0, %v1330_v11 }
  0x40   :  { %420 = vmatpush.bf16.msrb.mxu3 %v1455_v41 }
  0x44   :  { %421 = vmatpush.bf16.msrb.mxu3 %v1460_v44 }
  0x48   :  { %422 = vmatpush.bf16.msrb.mxu3 %v1464_v47 }
  0x87   :  { %v109_v24 = vpop.f32.mrf.mxu0 }
  0x88   :  { %v110_v26 = vadd.f32 %v1442_v25, %v109_v24 }
  0x8a   :  { %1190 = vtanh.f32 %v110_v26 }
  0x8f   :  { %v111_v27 = vpop.f32.mrf.mxu0 }
  0x90   :  { %v112_v28 = vadd.f32 %v1442_v25, %v111_v27  ;;  %v1191_v29 = vpop.eup %1190 }
  0x92   :  { %1192 = vtanh.f32 %v112_v28 }
  0x97   :  { %v114_v30 = vpop.f32.mrf.mxu0 }
  0x98   :  { %v1193_v31 = vpop.eup %1192  ;;  %v115_v36 = vadd.f32 %v1442_v25, %v114_v30 }
  0x99   :  { %v137_v32 = vpack.c.bf16 %v1193_v31, %v1191_v29 }
  0x9a   :  { %1194 = vtanh.f32 %v115_v36 }
  0x9b   :  { %1099 = vmatmul.msk.bf16.vlgmr.msra.gmra.mxu1 %vm87_vm0, %v137_v32  ;;  %1103 = vmatmul.msk.bf16.vlgmr.msra.gmra.mxu2 %vm87_vm0, %v137_v32 }
  0x9c   :  { %738 = vmatpush.bf16.msra.mxu2 %v1402_v7  ;;  %668 = vmatpush.bf16.msra.mxu1 %v1448_v35 }
  0x9d   :  { %v327_v1 = vpop.f32.mrf.mxu3 }
  0x9f   :  { %v116_v37 = vpop.f32.mrf.mxu0 }
  0xa0   :  { %v117_v40 = vadd.f32 %v1442_v25, %v116_v37  ;;  %739 = vmatpush.bf16.msra.mxu2 %v1406_v10  ;;  %v1195_v48 = vpop.eup %1194  ;;  %669 = vmatpush.bf16.msra.mxu1 %v1455_v41 }
  0xa2   :  { %1196 = vtanh.f32 %v117_v40 }
  0xa4   :  { %740 = vmatpush.bf16.msra.mxu2 %v1410_v13  ;;  %670 = vmatpush.bf16.msra.mxu1 %v1460_v44 }
  0xa5   :  { %v329_v2 = vpop.f32.mrf.mxu3 }
  0xa7   :  { %v119_v49 = vpop.f32.mrf.mxu0 }
  0xa8   :  { %v1197_v50 = vpop.eup %1196  ;;  %741 = vmatpush.bf16.msra.mxu2 %v1414_v16  ;;  %v120_v52 = vadd.f32 %v1442_v25, %v119_v49  ;;  %671 = vmatpush.bf16.msra.mxu1 %v1464_v47 }
  0xa9   :  { %v138_v51 = vpack.c.bf16 %v1197_v50, %v1195_v48  ;;  %v239_v50 = vadd.s32 128, %v238_v4 }
  0xaa   :  { %1198 = vtanh.f32 %v120_v52 }
  0xab   :  { %1100 = vmatmul.msk.bf16.gmra.mxu1 %vm87_vm0, %v138_v51  ;;  %1104 = vmatmul.msk.bf16.gmra.mxu2 %vm87_vm0, %v138_v51  ;;  %v251_v52 = vand.u32 127, %v239_v50 }
  0xad   :  { %vm265_vm4 = vcmp.ge.s32.totalorder %v251_v52, 64  ;;  %vm267_vm5 = vcmp.lt.s32.totalorder %v251_v52, 96 }
  0xae   :  { %v340_v31 = vpop.f32.mrf.mxu3  ;;  %vm269_vm6 = vmand %vm265_vm4, %vm267_vm5 }
  0xaf   :  { %v121_v53 = vpop.f32.mrf.mxu0 }
  0xb0   :  { %v122_v54 = vadd.f32 %v1442_v25, %v121_v53  ;;  %v1199_v55 = vpop.eup %1198 }
  0xb2   :  { %1200 = vtanh.f32 %v122_v54 }
  0xb6   :  { %v342_v37 = vpop.f32.mrf.mxu3 }
  0xb7   :  { %v124_v56 = vpop.f32.mrf.mxu0 }
  0xb8   :  { %v1201_v57 = vpop.eup %1200  ;;  %v125_v59 = vadd.f32 %v1442_v25, %v124_v56  ;;  %v1537_v56 = vsel %vm269_vm6, 1.0, %v1330_v11 }
  0xb9   :  { %v139_v58 = vpack.c.bf16 %v1201_v57, %v1199_v55 }
  0xba   :  { %1202 = vtanh.f32 %v125_v59 }
  0xbb   :  { %1101 = vmatmul.msk.bf16.gmra.mxu1 %vm87_vm0, %v139_v58  ;;  %1105 = vmatmul.msk.bf16.gmra.mxu2 %vm87_vm0, %v139_v58 }
  0xbf   :  { %v126_v60 = vpop.f32.mrf.mxu0 }
  0xc0   :  { %v127_v61 = vadd.f32 %v1442_v25, %v126_v60  ;;  %v1203_v62 = vpop.eup %1202  ;;  %v1540_v60 = vsel %vm269_vm6, 0.0, %v1330_v11 }
  0xc2   :  { %1204 = vtanh.f32 %v127_v61 }
  0xc8   :  { %v1205_v63 = vpop.eup %1204 }
  0xc9   :  { %v140_v0 = vpack.c.bf16 %v1205_v63, %v1203_v62 }
  0xcb   :  { %1102 = vmatmul.msk.bf16.gmra.mxu1 %vm87_vm0, %v140_v0  ;;  %1106 = vmatmul.msk.bf16.gmra.mxu2 %vm87_vm0, %v140_v0 }
 0x118   :  { %v180_v8 = vpop.f32.mrf.mxu1 }
 0x119   :  { %v181_v9 = vadd.f32 %v180_v8, %v1496_v6 }
 0x11b   :  { %v344_v14 = vadd.f32 %v327_v1, %v181_v9 }
 0x11d   :  { %v346_v17 = vmul.f32 %v344_v14, %v1499_v12 }
 0x11e   :  { %v209_v18 = vpop.f32.mrf.mxu2 }
 0x11f   :  { %1206 = vtanh.f32 %v346_v17  ;;  %v1502_v19 = vadd.f32 %v209_v18, %v146_v15 }
 0x120   :  { %v1504_v20 = vpop.f32.mrf.mxu1 }
 0x125   :  { %v1207_v21 = vpop.eup %1206 }
 0x126   :  { %v211_v23 = vpop.f32.mrf.mxu2  ;;  %v350_v24 = vmul.f32 %v1207_v21, %v1499_v12 }
 0x127   :  { %v1509_v25 = vadd.f32 %v211_v23, %v146_v15 }
 0x128   :  { %v1511_v26 = vpop.f32.mrf.mxu1  ;;  %v352_v27 = vadd.f32 %v350_v24, %v1506_v22 }
 0x12a   :  { %356 = vrot.lane.b32.xlu0 %v352_v27, %s1331_s4  ;;  %v354_v3 = vmul.f32 0.0, %v352_v27 }
 0x12e   :  { %v214_v28 = vpop.f32.mrf.mxu2 }
 0x12f   :  { %v1515_v29 = vadd.f32 %v214_v28, %v146_v15 }
 0x130   :  { %v187_v30 = vpop.f32.mrf.mxu1 }
 0x131   :  { %v1518_v32 = vadd.f32 %v187_v30, %v1496_v6 }
 0x136   :  { %v216_v33 = vpop.f32.mrf.mxu2 }
 0x137   :  { %v1520_v34 = vadd.f32 %v216_v33, %v146_v15 }
 0x138   :  { %v190_v36 = vpop.f32.mrf.mxu1 }
 0x139   :  { %v1523_v38 = vadd.f32 %v190_v36, %v1496_v6 }
 0x13e   :  { %v219_v39 = vpop.f32.mrf.mxu2 }
 0x13f   :  { %v1525_v40 = vadd.f32 %v219_v39, %v146_v15 }
 0x140   :  { %v192_v42 = vpop.f32.mrf.mxu1 }
 0x141   :  { %v1528_v43 = vadd.f32 %v192_v42, %v1496_v6 }
 0x146   :  { %v221_v45 = vpop.f32.mrf.mxu2 }
 0x147   :  { %v1530_v46 = vadd.f32 %v221_v45, %v146_v15 }
 0x148   :  { %v195_v48 = vpop.f32.mrf.mxu1 }
 0x149   :  { %v1533_v49 = vadd.f32 %v195_v48, %v1496_v6 }
 0x14e   :  { %v224_v51 = vpop.f32.mrf.mxu2 }
 0x14f   :  { %v1535_v53 = vadd.f32 %v224_v51, %v146_v15 }
 0x156   :  { %v226_v54 = vpop.f32.mrf.mxu2 }
 0x157   :  { %v227_v55 = vadd.f32 %v226_v54, %v146_v15 }
 0x159   :  { %v345_v57 = vadd.f32 %v340_v31, %v227_v55 }
 0x15b   :  { %v347_v58 = vmul.f32 %v345_v57, %v1537_v56 }
 0x15d   :  { %1208 = vtanh.f32 %v347_v58 }
 0x163   :  { %v1209_v59 = vpop.eup %1208 }
 0x164   :  { %v351_v61 = vmul.f32 %v1209_v59, %v1537_v56 }
 0x166   :  { %v353_v62 = vadd.f32 %v351_v61, %v1540_v60 }
 0x168   :  { %367 = vrot.lane.b32.xlu0 %v353_v62, %s1331_s4  ;;  %v365_v9 = vmul.f32 0.0, %v353_v62 }
 0x19c   :  { %v357_v63 = vpop.permute.xlu0 %356 }
 0x19d   :  { %v359_v0 = vmul.f32 %v357_v63, %v352_v27 }
 0x19f   :  { %361 = vrot.lane.b32.xlu1 %v359_v0, %s1332_s29 }
 0x1da   :  { %v368_v1 = vpop.permute.xlu0 %367 }
 0x1db   :  { %v370_v2 = vmul.f32 %v368_v1, %v353_v62 }
 0x1dd   :  { %372 = vrot.lane.b32.xlu1 %v370_v2, %s1332_s29 }
 0x211   :  { %v362_v4 = vpop.permute.xlu1 %361 }
 0x212   :  { %v364_v5 = vadd.f32 %v362_v4, %v354_v3 }
 0x214   :  { %1210 = vtanh.f32 %v364_v5 }
 0x21a   :  { %v1211_v8 = vpop.eup %1210 }
 0x21b   :  { %378 = vrot.lane.b32.xlu2 %v1211_v8, %s1331_s4 }
 0x24f   :  { %v373_v11 = vpop.permute.xlu1 %372 }
 0x250   :  { %v375_v14 = vadd.f32 %v373_v11, %v365_v9 }
 0x252   :  { %1212 = vtanh.f32 %v375_v14 }
 0x258   :  { %v1213_v15 = vpop.eup %1212 }
 0x259   :  { %384 = vrot.lane.b32.xlu2 %v1213_v15, %s1331_s4 }
 0x275   :  { %v379_v17 = vpop.permute.xlu2 %378 }
 0x276   :  { %v381_v18 = vmul.f32 %v379_v17, %v352_v27  ;;  %v183_v27 = vadd.f32 %v1504_v20, %v1496_v6 }
 0x278   :  { %389 = vrot.lane.b32.xlu0 %v381_v18, %s1332_s29 }
 0x2b3   :  { %v385_v21 = vpop.permute.xlu2 %384 }
 0x2b4   :  { %v387_v23 = vmul.f32 %v385_v21, %v353_v62 }
 0x2b6   :  { %393 = vrot.lane.b32.xlu1 %v387_v23, %s1331_s4 }
 0x2ea   :  { %v390_v24 = vpop.permute.xlu0 %389 }
 0x328   :  { %v394_v28 = vpop.permute.xlu1 %393 }
 0x329   :  { %v397_v30 = vsel %vm396_vm7, %v390_v24, %v394_v28  ;;  %v186_v24 = vadd.f32 %v1511_v26, %v1496_v6 }
 0x32a   :  { %v398_v31 = vpack.c.bf16 %v397_v30, %v397_v30 }
 0x32c   :  { %1139 = vmatmul.msk.bf16.vlgmr.msra.gmra.mxu3 %vm314_vm8, %v398_v31 }
 0x32d   :  { %585 = vmatpush.bf16.msra.mxu3 %v1448_v35 }
 0x331   :  { %586 = vmatpush.bf16.msra.mxu3 %v1455_v41 }
 0x335   :  { %587 = vmatpush.bf16.msra.mxu3 %v1460_v44 }
 0x339   :  { %588 = vmatpush.bf16.msra.mxu3 %v1464_v47 }
 0x33c   :  { %1140 = vmatmul.msk.bf16.vlgmr.msrb.gmra.mxu3 %vm314_vm8, %v398_v31 }
 0x33d   :  { %751 = vmatpush.bf16.msrb.mxu3 %v1448_v35 }
 0x341   :  { %752 = vmatpush.bf16.msrb.mxu3 %v1455_v41 }
 0x345   :  { %753 = vmatpush.bf16.msrb.mxu3 %v1460_v44 }
 0x349   :  { %754 = vmatpush.bf16.msrb.mxu3 %v1464_v47 }
 0x3af   :  { %v411_v33 = vpop.f32.mrf.mxu3 }
 0x3b0   :  { %v428_v36 = vadd.f32 %v411_v33, %v183_v27 }
 0x3b2   :  { %v430_v37 = vmul.f32 %v428_v36, %v1499_v12 }
 0x3b4   :  { %1214 = vtanh.f32 %v430_v37 }
 0x3b7   :  { %v413_v39 = vpop.f32.mrf.mxu3 }
 0x3ba   :  { %v1215_v42 = vpop.eup %1214 }
 0x3bb   :  { %v434_v45 = vmul.f32 %v1215_v42, %v1499_v12 }
 0x3bd   :  { %v436_v48 = vadd.f32 %v434_v45, %v1506_v22 }
 0x3bf   :  { %440 = vrot.lane.b32.xlu2 %v436_v48, %s1331_s4  ;;  %v424_v50 = vpop.f32.mrf.mxu3 }
 0x3c0   :  { %v429_v51 = vadd.f32 %v424_v50, %v1535_v53  ;;  %v438_v53 = vmul.f32 %v436_v48, %v364_v5 }
 0x3c2   :  { %v431_v52 = vmul.f32 %v429_v51, %v1537_v56 }
 0x3c4   :  { %1216 = vtanh.f32 %v431_v52 }
 0x3c7   :  { %v426_v20 = vpop.f32.mrf.mxu3 }
 0x3ca   :  { %v1217_v54 = vpop.eup %1216 }
 0x3cb   :  { %v435_v55 = vmul.f32 %v1217_v54, %v1537_v56 }
 0x3cd   :  { %v437_v57 = vadd.f32 %v435_v55, %v1540_v60 }
 0x3cf   :  { %451 = vrot.lane.b32.xlu0 %v437_v57, %s1331_s4  ;;  %v449_v2 = vmul.f32 %v437_v57, %v375_v14  ;;  %v1590_v14 = vpop.f32.mrf.mxu1 }
 0x419   :  { %v441_v58 = vpop.permute.xlu2 %440 }
 0x41a   :  { %v443_v59 = vmul.f32 %v441_v58, %v436_v48 }
 0x41c   :  { %445 = vrot.lane.b32.xlu1 %v443_v59, %s1332_s29 }
 0x441   :  { %v452_v61 = vpop.permute.xlu0 %451 }
 0x442   :  { %v454_v62 = vmul.f32 %v452_v61, %v437_v57 }
 0x444   :  { %456 = vrot.lane.b32.xlu2 %v454_v62, %s1332_s29 }
 0x48e   :  { %v446_v63 = vpop.permute.xlu1 %445 }
 0x48f   :  { %v448_v0 = vadd.f32 %v446_v63, %v438_v53 }
 0x491   :  { %1218 = vtanh.f32 %v448_v0 }
 0x497   :  { %v1219_v1 = vpop.eup %1218 }
 0x498   :  { %462 = vrot.lane.b32.xlu0 %v1219_v1, %s1331_s4 }
 0x49e   :  { %v457_v3 = vpop.permute.xlu2 %456 }
 0x49f   :  { %v459_v4 = vadd.f32 %v457_v3, %v449_v2 }
 0x4a1   :  { %1220 = vtanh.f32 %v459_v4 }
 0x4a7   :  { %v1221_v8 = vpop.eup %1220 }
 0x4a8   :  { %468 = vrot.lane.b32.xlu1 %v1221_v8, %s1331_s4 }
 0x50a   :  { %v463_v9 = vpop.permute.xlu0 %462 }
 0x50b   :  { %v465_v11 = vmul.f32 %v463_v9, %v436_v48 }
 0x50d   :  { %473 = vrot.lane.b32.xlu2 %v465_v11, %s1332_s29 }
 0x51a   :  { %v469_v15 = vpop.permute.xlu1 %468 }
 0x51b   :  { %v471_v17 = vmul.f32 %v469_v15, %v437_v57 }
 0x51d   :  { %477 = vrot.lane.b32.xlu0 %v471_v17, %s1331_s4 }
 0x567   :  { %v474_v5 = vpop.permute.xlu2 %473 }
 0x58f   :  { %v478_v18 = vpop.permute.xlu0 %477 }
 0x590   :  { %v480_v21 = vsel %vm396_vm7, %v474_v5, %v478_v18 }
 0x591   :  { %v481_v23 = vpack.c.bf16 %v480_v21, %v480_v21 }
 0x593   :  { %1141 = vmatmul.msk.bf16.vlgmr.msrb.gmra.mxu0 %vm314_vm8, %v481_v23  ;;  %1142 = vmatmul.msk.bf16.vlgmr.msrb.gmra.mxu1 %vm314_vm8, %v481_v23 }
 0x594   :  { %821 = vmatpush.bf16.msrb.mxu0 %v1402_v7  ;;  %834 = vmatpush.bf16.msrb.mxu1 %v1448_v35 }
 0x598   :  { %822 = vmatpush.bf16.msrb.mxu0 %v1406_v10  ;;  %835 = vmatpush.bf16.msrb.mxu1 %v1455_v41 }
 0x59c   :  { %823 = vmatpush.bf16.msrb.mxu0 %v1410_v13  ;;  %836 = vmatpush.bf16.msrb.mxu1 %v1460_v44 }
 0x5a0   :  { %824 = vmatpush.bf16.msrb.mxu0 %v1414_v16  ;;  %837 = vmatpush.bf16.msrb.mxu1 %v1464_v47 }
 0x610   :  { %v494_v28 = vpop.f32.mrf.mxu0  ;;  %v507_v30 = vpop.f32.mrf.mxu1 }
 0x611   :  { %v511_v31 = vadd.f32 %v494_v28, %v186_v24  ;;  %v512_v27 = vadd.f32 %v507_v30, %v1530_v46 }
 0x613   :  { %v513_v33 = vmul.f32 %v511_v31, %v1499_v12  ;;  %v514_v36 = vmul.f32 %v512_v27, %v1537_v56 }
 0x615   :  { %1222 = vtanh.f32 %v513_v33 }
 0x616   :  { %1224 = vtanh.f32 %v514_v36 }
 0x618   :  { %v496_v37 = vpop.f32.mrf.mxu0  ;;  %v509_v39 = vpop.f32.mrf.mxu1 }
 0x61b   :  { %v1223_v42 = vpop.eup %1222 }
 0x61c   :  { %v1225_v45 = vpop.eup %1224  ;;  %v517_v48 = vmul.f32 %v1223_v42, %v1499_v12 }
 0x61d   :  { %v518_v50 = vmul.f32 %v1225_v45, %v1537_v56 }
 0x61e   :  { %v519_v26 = vadd.f32 %v517_v48, %v1506_v22 }
 0x61f   :  { %v520_v51 = vadd.f32 %v518_v50, %v1540_v60 }
 0x620   :  { %523 = vrot.lane.b32.xlu1 %v519_v26, %s1331_s4  ;;  %v521_v61 = vmul.f32 %v519_v26, %v448_v0 }
 0x621   :  { %534 = vrot.lane.b32.xlu2 %v520_v51, %s1331_s4  ;;  %v532_v55 = vmul.f32 %v520_v51, %v459_v4 }
 0x67b   :  { %v535_v46 = vpop.permute.xlu2 %534 }
 0x67c   :  { %v537_v52 = vmul.f32 %v535_v46, %v520_v51 }
 0x67e   :  { %539 = vrot.lane.b32.xlu1 %v537_v52, %s1332_s29 }
 0x692   :  { %v524_v20 = vpop.permute.xlu1 %523 }
 0x693   :  { %v526_v54 = vmul.f32 %v524_v20, %v519_v26 }
 0x695   :  { %528 = vrot.lane.b32.xlu0 %v526_v54, %s1332_s29 }
 0x6f0   :  { %v540_v57 = vpop.permute.xlu1 %539 }
 0x6f1   :  { %v542_v58 = vadd.f32 %v540_v57, %v532_v55 }
 0x6f3   :  { %1226 = vtanh.f32 %v542_v58 }
 0x6f9   :  { %v1227_v59 = vpop.eup %1226 }
 0x6fa   :  { %551 = vrot.lane.b32.xlu0 %v1227_v59, %s1331_s4 }
 0x707   :  { %v529_v62 = vpop.permute.xlu0 %528 }
 0x708   :  { %v531_v53 = vadd.f32 %v529_v62, %v521_v61 }
 0x70a   :  { %1228 = vtanh.f32 %v531_v53 }
 0x710   :  { %v1229_v63 = vpop.eup %1228 }
 0x711   :  { %545 = vrot.lane.b32.xlu2 %v1229_v63, %s1331_s4 }
 0x76b   :  { %v546_v1 = vpop.permute.xlu2 %545 }
 0x76c   :  { %v552_v2 = vpop.permute.xlu0 %551  ;;  %v548_v3 = vmul.f32 %v546_v1, %v519_v26 }
 0x76d   :  { %v554_v8 = vmul.f32 %v552_v2, %v520_v51 }
 0x76e   :  { %556 = vrot.lane.b32.xlu1 %v548_v3, %s1332_s29 }
 0x76f   :  { %560 = vrot.lane.b32.xlu2 %v554_v8, %s1331_s4 }
 0x7c9   :  { %v561_v4 = vpop.permute.xlu2 %560 }
 0x7e0   :  { %v557_v9 = vpop.permute.xlu1 %556 }
 0x7e1   :  { %v563_v11 = vsel %vm396_vm7, %v557_v9, %v561_v4 }
 0x7e2   :  { %v564_v15 = vpack.c.bf16 %v563_v11, %v563_v11 }
 0x7e4   :  { %1143 = vmatmul.msk.bf16.vlgmr.msrb.gmra.mxu2 %vm314_vm8, %v564_v15  ;;  %1144 = vmatmul.msk.bf16.vlgmr.msra.gmra.mxu3 %vm314_vm8, %v564_v15 }
 0x7e5   :  { %917 = vmatpush.bf16.msra.mxu3 %v1448_v35  ;;  %904 = vmatpush.bf16.msrb.mxu2 %v1402_v7 }
 0x7e9   :  { %918 = vmatpush.bf16.msra.mxu3 %v1455_v41  ;;  %905 = vmatpush.bf16.msrb.mxu2 %v1406_v10 }
 0x7ed   :  { %919 = vmatpush.bf16.msra.mxu3 %v1460_v44  ;;  %906 = vmatpush.bf16.msrb.mxu2 %v1410_v13 }
 0x7f1   :  { %920 = vmatpush.bf16.msra.mxu3 %v1464_v47  ;;  %907 = vmatpush.bf16.msrb.mxu2 %v1414_v16 }
 0x867   :  { %v577_v0 = vpop.f32.mrf.mxu2  ;;  %v590_v17 = vpop.f32.mrf.mxu3 }
 0x868   :  { %v594_v5 = vadd.f32 %v577_v0, %v1518_v32  ;;  %v595_v35 = vadd.f32 %v590_v17, %v1525_v40 }
 0x86a   :  { %v596_v7 = vmul.f32 %v594_v5, %v1499_v12  ;;  %v597_v41 = vmul.f32 %v595_v35, %v1537_v56 }
 0x86c   :  { %1230 = vtanh.f32 %v596_v7 }
 0x86d   :  { %1232 = vtanh.f32 %v597_v41 }
 0x86f   :  { %v579_v10 = vpop.f32.mrf.mxu2  ;;  %v592_v44 = vpop.f32.mrf.mxu3 }
 0x872   :  { %v1231_v18 = vpop.eup %1230 }
 0x873   :  { %v1233_v13 = vpop.eup %1232  ;;  %v600_v47 = vmul.f32 %v1231_v18, %v1499_v12 }
 0x874   :  { %v601_v16 = vmul.f32 %v1233_v13, %v1537_v56 }
 0x875   :  { %v602_v21 = vadd.f32 %v600_v47, %v1506_v22 }
 0x876   :  { %v603_v32 = vadd.f32 %v601_v16, %v1540_v60 }
 0x877   :  { %606 = vrot.lane.b32.xlu0 %v602_v21, %s1331_s4  ;;  %v604_v30 = vmul.f32 %v602_v21, %v531_v53 }
 0x878   :  { %617 = vrot.lane.b32.xlu1 %v603_v32, %s1331_s4  ;;  %v615_v36 = vmul.f32 %v603_v32, %v542_v58 }
 0x8e9   :  { %v607_v40 = vpop.permute.xlu0 %606 }
 0x8ea   :  { %v609_v23 = vmul.f32 %v607_v40, %v602_v21  ;;  %v618_v24 = vpop.permute.xlu1 %617 }
 0x8eb   :  { %v620_v28 = vmul.f32 %v618_v24, %v603_v32 }
 0x8ec   :  { %611 = vrot.lane.b32.xlu2 %v609_v23, %s1332_s29 }
 0x8ed   :  { %622 = vrot.lane.b32.xlu0 %v620_v28, %s1332_s29 }
 0x946   :  { %v612_v31 = vpop.permute.xlu2 %611 }
 0x947   :  { %v614_v27 = vadd.f32 %v612_v31, %v604_v30 }
 0x949   :  { %1234 = vtanh.f32 %v614_v27 }
 0x94f   :  { %v1235_v33 = vpop.eup %1234 }
 0x950   :  { %628 = vrot.lane.b32.xlu1 %v1235_v33, %s1331_s4 }
 0x95f   :  { %v623_v37 = vpop.permute.xlu0 %622 }
 0x960   :  { %v625_v39 = vadd.f32 %v623_v37, %v615_v36 }
 0x962   :  { %1236 = vtanh.f32 %v625_v39 }
 0x968   :  { %v1237_v42 = vpop.eup %1236 }
 0x969   :  { %634 = vrot.lane.b32.xlu2 %v1237_v42, %s1331_s4 }
 0x9c2   :  { %v629_v45 = vpop.permute.xlu1 %628 }
 0x9c3   :  { %v631_v48 = vmul.f32 %v629_v45, %v602_v21  ;;  %v635_v50 = vpop.permute.xlu2 %634 }
 0x9c4   :  { %v637_v26 = vmul.f32 %v635_v50, %v603_v32 }
 0x9c5   :  { %639 = vrot.lane.b32.xlu0 %v631_v48, %s1332_s29 }
 0x9c6   :  { %643 = vrot.lane.b32.xlu1 %v637_v26, %s1331_s4 }
 0xa37   :  { %v640_v51 = vpop.permute.xlu0 %639 }
 0xa38   :  { %v644_v46 = vpop.permute.xlu1 %643 }
 0xa39   :  { %v646_v52 = vsel %vm396_vm7, %v640_v51, %v644_v46 }
 0xa3a   :  { %v647_v20 = vpack.c.bf16 %v646_v52, %v646_v52 }
 0xa3c   :  { %1145 = vmatmul.msk.bf16.vlgmr.msra.gmra.mxu0 %vm314_vm8, %v647_v20  ;;  %1146 = vmatmul.msk.bf16.vlgmr.msra.gmra.mxu1 %vm314_vm8, %v647_v20 }
 0xab9   :  { %v660_v54 = vpop.f32.mrf.mxu0  ;;  %v673_v55 = vpop.f32.mrf.mxu1 }
 0xaba   :  { %v677_v57 = vadd.f32 %v660_v54, %v1523_v38  ;;  %v678_v58 = vadd.f32 %v673_v55, %v1520_v34 }
 0xabc   :  { %v679_v59 = vmul.f32 %v677_v57, %v1499_v12  ;;  %v680_v61 = vmul.f32 %v678_v58, %v1537_v56 }
 0xabe   :  { %1238 = vtanh.f32 %v679_v59 }
 0xabf   :  { %1240 = vtanh.f32 %v680_v61 }
 0xac1   :  { %v662_v62 = vpop.f32.mrf.mxu0  ;;  %v675_v53 = vpop.f32.mrf.mxu1 }
 0xac4   :  { %v1239_v63 = vpop.eup %1238 }
 0xac5   :  { %v1241_v1 = vpop.eup %1240  ;;  %v683_v2 = vmul.f32 %v1239_v63, %v1499_v12 }
 0xac6   :  { %v684_v3 = vmul.f32 %v1241_v1, %v1537_v56 }
 0xac7   :  { %v685_v8 = vadd.f32 %v683_v2, %v1506_v22 }
 0xac8   :  { %v686_v38 = vadd.f32 %v684_v3, %v1540_v60 }
 0xac9   :  { %689 = vrot.lane.b32.xlu2 %v685_v8, %s1331_s4  ;;  %v687_v15 = vmul.f32 %v685_v8, %v614_v27 }
 0xaca   :  { %700 = vrot.lane.b32.xlu0 %v686_v38, %s1331_s4  ;;  %v698_v17 = vmul.f32 %v686_v38, %v625_v39 }
 0xb23   :  { %v690_v34 = vpop.permute.xlu2 %689 }
 0xb24   :  { %v692_v4 = vmul.f32 %v690_v34, %v685_v8 }
 0xb26   :  { %694 = vrot.lane.b32.xlu1 %v692_v4, %s1332_s29 }
 0xb3c   :  { %v701_v9 = vpop.permute.xlu0 %700 }
 0xb3d   :  { %v703_v11 = vmul.f32 %v701_v9, %v686_v38 }
 0xb3f   :  { %705 = vrot.lane.b32.xlu2 %v703_v11, %s1332_s29 }
 0xb98   :  { %v695_v0 = vpop.permute.xlu1 %694 }
 0xb99   :  { %v697_v5 = vadd.f32 %v695_v0, %v687_v15  ;;  %v706_v35 = vpop.permute.xlu2 %705 }
 0xb9a   :  { %v708_v7 = vadd.f32 %v706_v35, %v698_v17 }
 0xb9b   :  { %1242 = vtanh.f32 %v697_v5 }
 0xb9c   :  { %1244 = vtanh.f32 %v708_v7 }
 0xba1   :  { %v1243_v41 = vpop.eup %1242 }
 0xba2   :  { %v1245_v10 = vpop.eup %1244  ;;  %711 = vrot.lane.b32.xlu0 %v1243_v41, %s1331_s4 }
 0xba3   :  { %717 = vrot.lane.b32.xlu1 %v1245_v10, %s1331_s4 }
 0xc14   :  { %v712_v44 = vpop.permute.xlu0 %711 }
 0xc15   :  { %v718_v18 = vpop.permute.xlu1 %717  ;;  %v714_v13 = vmul.f32 %v712_v44, %v685_v8 }
 0xc16   :  { %v720_v47 = vmul.f32 %v718_v18, %v686_v38 }
 0xc17   :  { %722 = vrot.lane.b32.xlu2 %v714_v13, %s1332_s29 }
 0xc18   :  { %726 = vrot.lane.b32.xlu0 %v720_v47, %s1331_s4 }
 0xc71   :  { %v723_v16 = vpop.permute.xlu2 %722 }
 0xc8a   :  { %v727_v21 = vpop.permute.xlu0 %726 }
 0xc8b   :  { %v729_v32 = vsel %vm396_vm7, %v723_v16, %v727_v21 }
 0xc8c   :  { %v730_v40 = vpack.c.bf16 %v729_v32, %v729_v32 }
 0xc8e   :  { %1147 = vmatmul.msk.bf16.vlgmr.msra.gmra.mxu2 %vm314_vm8, %v730_v40  ;;  %1148 = vmatmul.msk.bf16.vlgmr.msrb.gmra.mxu3 %vm314_vm8, %v730_v40 }
 0xd11   :  { %v743_v23 = vpop.f32.mrf.mxu2  ;;  %v756_v24 = vpop.f32.mrf.mxu3 }
 0xd12   :  { %v760_v28 = vadd.f32 %v743_v23, %v1528_v43  ;;  %v761_v30 = vadd.f32 %v756_v24, %v1515_v29 }
 0xd14   :  { %v762_v31 = vmul.f32 %v760_v28, %v1499_v12  ;;  %v763_v27 = vmul.f32 %v761_v30, %v1537_v56 }
 0xd16   :  { %1246 = vtanh.f32 %v762_v31 }
 0xd17   :  { %1248 = vtanh.f32 %v763_v27 }
 0xd19   :  { %v745_v33 = vpop.f32.mrf.mxu2  ;;  %v758_v36 = vpop.f32.mrf.mxu3 }
 0xd1c   :  { %v1247_v37 = vpop.eup %1246 }
 0xd1d   :  { %v1249_v39 = vpop.eup %1248  ;;  %v766_v42 = vmul.f32 %v1247_v37, %v1499_v12 }
 0xd1e   :  { %v767_v45 = vmul.f32 %v1249_v39, %v1537_v56 }
 0xd1f   :  { %v768_v48 = vadd.f32 %v766_v42, %v1506_v22 }
 0xd20   :  { %v769_v43 = vadd.f32 %v767_v45, %v1540_v60  ;;  %v198_v45 = vadd.f32 %v1590_v14, %v1496_v6 }
 0xd21   :  { %772 = vrot.lane.b32.xlu1 %v768_v48, %s1331_s4  ;;  %v770_v55 = vmul.f32 %v768_v48, %v697_v5 }
 0xd22   :  { %783 = vrot.lane.b32.xlu2 %v769_v43, %s1331_s4  ;;  %v781_v46 = vmul.f32 %v769_v43, %v708_v7 }
 0xd7c   :  { %v784_v29 = vpop.permute.xlu2 %783 }
 0xd7d   :  { %v786_v50 = vmul.f32 %v784_v29, %v769_v43 }
 0xd7f   :  { %788 = vrot.lane.b32.xlu1 %v786_v50, %s1332_s29 }
 0xd93   :  { %v773_v26 = vpop.permute.xlu1 %772 }
 0xd94   :  { %v775_v51 = vmul.f32 %v773_v26, %v768_v48 }
 0xd96   :  { %777 = vrot.lane.b32.xlu0 %v775_v51, %s1332_s29 }
 0xdf1   :  { %v789_v52 = vpop.permute.xlu1 %788 }
 0xdf2   :  { %v791_v20 = vadd.f32 %v789_v52, %v781_v46 }
 0xdf4   :  { %1250 = vtanh.f32 %v791_v20 }
 0xdfa   :  { %v1251_v54 = vpop.eup %1250 }
 0xdfb   :  { %800 = vrot.lane.b32.xlu0 %v1251_v54, %s1331_s4 }
 0xe08   :  { %v778_v57 = vpop.permute.xlu0 %777 }
 0xe09   :  { %v780_v58 = vadd.f32 %v778_v57, %v770_v55 }
 0xe0b   :  { %1252 = vtanh.f32 %v780_v58 }
 0xe11   :  { %v1253_v59 = vpop.eup %1252 }
 0xe12   :  { %794 = vrot.lane.b32.xlu2 %v1253_v59, %s1331_s4 }
 0xe6c   :  { %v795_v61 = vpop.permute.xlu2 %794 }
 0xe6d   :  { %v797_v62 = vmul.f32 %v795_v61, %v768_v48  ;;  %v801_v53 = vpop.permute.xlu0 %800 }
 0xe6e   :  { %v803_v63 = vmul.f32 %v801_v53, %v769_v43 }
 0xe6f   :  { %805 = vrot.lane.b32.xlu1 %v797_v62, %s1332_s29 }
 0xe70   :  { %809 = vrot.lane.b32.xlu2 %v803_v63, %s1331_s4 }
 0xeca   :  { %v810_v1 = vpop.permute.xlu2 %809 }
 0xee1   :  { %v806_v2 = vpop.permute.xlu1 %805 }
 0xee2   :  { %v812_v3 = vsel %vm396_vm7, %v806_v2, %v810_v1 }
 0xee3   :  { %v813_v8 = vpack.c.bf16 %v812_v3, %v812_v3 }
 0xee5   :  { %1149 = vmatmul.msk.bf16.vlgmr.msrb.gmra.mxu0 %vm314_vm8, %v813_v8  ;;  %1150 = vmatmul.msk.bf16.vlgmr.msrb.gmra.mxu1 %vm314_vm8, %v813_v8 }
 0xf62   :  { %v826_v38 = vpop.f32.mrf.mxu0  ;;  %v839_v34 = vpop.f32.mrf.mxu1 }
 0xf63   :  { %v843_v4 = vadd.f32 %v826_v38, %v1533_v49  ;;  %v844_v9 = vadd.f32 %v839_v34, %v1509_v25  ;;  %v1178_v34 = vld [vmem:[%s1736_s6 + $0x8] sm:$0xff] }
 0xf64   :  { %1015 = vmatpush.bf16.msra.mxu0 %v1178_v34 }
 0xf65   :  { %v845_v11 = vmul.f32 %v843_v4, %v1499_v12  ;;  %v846_v15 = vmul.f32 %v844_v9, %v1537_v56  ;;  %v1177_v4 = vld [vmem:[%s1736_s6] sm:$0xff]  ;;  %s1334_s6 = smov [#allocation5]  }
 0xf67   :  { %1254 = vtanh.f32 %v845_v11 }
 0xf68   :  { %1256 = vtanh.f32 %v846_v15  ;;  %1016 = vmatpush.bf16.msra.mxu0 %v1177_v4 }
 0xf6a   :  { %v828_v0 = vpop.f32.mrf.mxu0  ;;  %v841_v17 = vpop.f32.mrf.mxu1 }
 0xf6d   :  { %v1255_v5 = vpop.eup %1254 }
 0xf6e   :  { %v1257_v35 = vpop.eup %1256  ;;  %v849_v7 = vmul.f32 %v1255_v5, %v1499_v12 }
 0xf6f   :  { %v850_v41 = vmul.f32 %v1257_v35, %v1537_v56 }
 0xf70   :  { %v851_v10 = vadd.f32 %v849_v7, %v1506_v22  ;;  %v1189_v7 = vld [vmem:[%s1737_s7] ss:$0 sm:$0xff]  ;;  %s1055_s7 = sshll.u32 %s1334_s6, 4  ;;  %s1056_s7 = int_to_ptr.vmem [resolvable:$true] %s1055_s7 }
 0xf71   :  { %v852_v49 = vadd.f32 %v850_v41, %v1540_v60 }
 0xf72   :  { %855 = vrot.lane.b32.xlu0 %v851_v10, %s1331_s4  ;;  %v853_v47 = vmul.f32 %v851_v10, %v780_v58 }
 0xf73   :  { %866 = vrot.lane.b32.xlu1 %v852_v49, %s1331_s4  ;;  %v864_v40 = vmul.f32 %v852_v49, %v791_v20 }
 0xfe4   :  { %v856_v25 = vpop.permute.xlu0 %855 }
 0xfe5   :  { %v867_v44 = vpop.permute.xlu1 %866  ;;  %v858_v18 = vmul.f32 %v856_v25, %v851_v10 }
 0xfe6   :  { %v869_v13 = vmul.f32 %v867_v44, %v852_v49 }
 0xfe7   :  { %860 = vrot.lane.b32.xlu2 %v858_v18, %s1332_s29 }
 0xfe8   :  { %871 = vrot.lane.b32.xlu0 %v869_v13, %s1332_s29 }
0x1041   :  { %v861_v16 = vpop.permute.xlu2 %860 }
0x1042   :  { %v863_v21 = vadd.f32 %v861_v16, %v853_v47 }
0x1044   :  { %1258 = vtanh.f32 %v863_v21 }
0x104a   :  { %v1259_v32 = vpop.eup %1258 }
0x104b   :  { %877 = vrot.lane.b32.xlu1 %v1259_v32, %s1331_s4 }
0x105a   :  { %v872_v23 = vpop.permute.xlu0 %871 }
0x105b   :  { %v874_v24 = vadd.f32 %v872_v23, %v864_v40 }
0x105d   :  { %1260 = vtanh.f32 %v874_v24 }
0x1063   :  { %v1261_v28 = vpop.eup %1260 }
0x1064   :  { %883 = vrot.lane.b32.xlu2 %v1261_v28, %s1331_s4 }
0x10bd   :  { %v878_v30 = vpop.permute.xlu1 %877 }
0x10be   :  { %v884_v31 = vpop.permute.xlu2 %883  ;;  %v880_v27 = vmul.f32 %v878_v30, %v851_v10 }
0x10bf   :  { %v886_v33 = vmul.f32 %v884_v31, %v852_v49 }
0x10c0   :  { %888 = vrot.lane.b32.xlu0 %v880_v27, %s1332_s29 }
0x10c1   :  { %892 = vrot.lane.b32.xlu1 %v886_v33, %s1331_s4 }
0x1132   :  { %v889_v36 = vpop.permute.xlu0 %888 }
0x1133   :  { %v893_v37 = vpop.permute.xlu1 %892 }
0x1134   :  { %v895_v39 = vsel %vm396_vm7, %v889_v36, %v893_v37 }
0x1135   :  { %v896_v42 = vpack.c.bf16 %v895_v39, %v895_v39 }
0x1137   :  { %1151 = vmatmul.msk.bf16.vlgmr.msrb.gmra.mxu2 %vm314_vm8, %v896_v42  ;;  %1152 = vmatmul.msk.bf16.vlgmr.msra.gmra.mxu3 %vm314_vm8, %v896_v42 }
0x11ba   :  { %v909_v48 = vpop.f32.mrf.mxu2  ;;  %v922_v43 = vpop.f32.mrf.mxu3 }
0x11bb   :  { %v926_v29 = vadd.f32 %v909_v48, %v198_v45  ;;  %v927_v50 = vadd.f32 %v922_v43, %v1502_v19 }
0x11bd   :  { %v928_v26 = vmul.f32 %v926_v29, %v1499_v12  ;;  %v929_v51 = vmul.f32 %v927_v50, %v1537_v56 }
0x11bf   :  { %1262 = vtanh.f32 %v928_v26 }
0x11c0   :  { %1264 = vtanh.f32 %v929_v51 }
0x11c2   :  { %v911_v46 = vpop.f32.mrf.mxu2  ;;  %v924_v52 = vpop.f32.mrf.mxu3 }
0x11c5   :  { %v1263_v20 = vpop.eup %1262 }
0x11c6   :  { %v1265_v54 = vpop.eup %1264  ;;  %v932_v55 = vmul.f32 %v1263_v20, %v1499_v12 }
0x11c7   :  { %v933_v57 = vmul.f32 %v1265_v54, %v1537_v56 }
0x11c8   :  { %v934_v6 = vadd.f32 %v932_v55, %v1506_v22 }
0x11c9   :  { %v935_v14 = vadd.f32 %v933_v57, %v1540_v60 }
0x11ca   :  { %938 = vrot.lane.b32.xlu2 %v934_v6, %s1331_s4  ;;  %v936_v62 = vmul.f32 %v934_v6, %v863_v21 }
0x11cb   :  { %949 = vrot.lane.b32.xlu0 %v935_v14, %s1331_s4  ;;  %v947_v53 = vmul.f32 %v935_v14, %v874_v24 }
0x1224   :  { %v939_v19 = vpop.permute.xlu2 %938 }
0x1225   :  { %v941_v58 = vmul.f32 %v939_v19, %v934_v6 }
0x1227   :  { %943 = vrot.lane.b32.xlu1 %v941_v58, %s1332_s29 }
0x123d   :  { %v950_v59 = vpop.permute.xlu0 %949 }
0x123e   :  { %v952_v61 = vmul.f32 %v950_v59, %v935_v14 }
0x1240   :  { %954 = vrot.lane.b32.xlu2 %v952_v61, %s1332_s29 }
0x1299   :  { %v944_v12 = vpop.permute.xlu1 %943 }
0x129a   :  { %v946_v56 = vadd.f32 %v944_v12, %v936_v62  ;;  %v955_v63 = vpop.permute.xlu2 %954 }
0x129b   :  { %v957_v22 = vadd.f32 %v955_v63, %v947_v53 }
0x129c   :  { %1266 = vtanh.f32 %v946_v56 }
0x129d   :  { %1268 = vtanh.f32 %v957_v22 }
0x12a2   :  { %v1267_v60 = vpop.eup %1266 }
0x12a3   :  { %v1269_v1 = vpop.eup %1268  ;;  %960 = vrot.lane.b32.xlu0 %v1267_v60, %s1331_s4 }
0x12a4   :  { %966 = vrot.lane.b32.xlu1 %v1269_v1, %s1331_s4 }
0x1315   :  { %v961_v2 = vpop.permute.xlu0 %960 }
0x1316   :  { %v963_v3 = vmul.f32 %v961_v2, %v934_v6  ;;  %v967_v8 = vpop.permute.xlu1 %966 }
0x1317   :  { %v969_v38 = vmul.f32 %v967_v8, %v935_v14 }
0x1318   :  { %971 = vrot.lane.b32.xlu2 %v963_v3, %s1332_s29 }
0x1319   :  { %975 = vrot.lane.b32.xlu0 %v969_v38, %s1331_s4 }
0x1372   :  { %v972_v9 = vpop.permute.xlu2 %971 }
0x138b   :  { %v976_v11 = vpop.permute.xlu0 %975 }
0x138c   :  { %v978_v15 = vsel %vm396_vm7, %v972_v9, %v976_v11 }
0x138d   :  { %v979_v0 = vmul.f32 0.5, %v978_v15 }
0x138f   :  { %981 = vrot.lane.b32.xlu1 %v979_v0, %s1333_s12 }
0x1401   :  { %v982_v17 = vpop.permute.xlu1 %981 }
0x1402   :  { %v984_v5 = vadd.f32 %v982_v17, %v978_v15 }
0x1404   :  { %v985_v35 = vpack.c.bf16 %v984_v5, %v984_v5 }
0x1406   :  { %1161 = vmatmul.msk.bf16.vlgmr.msra.gmra.mxu0 %vm396_vm7, %v985_v35 }
0x1483   :  { %v1018_v41 = vpop.f32.mrf.mxu0 }
0x1484   :  { %v1019_v10 = vadd.f32 %v1189_v7, %v1018_v41 }
0x1486   :  { %v1023_v49 = vsel %vm1022_vm9, %v1019_v10, -inf }
0x1487   :  { %1024 = vmax.xlane.f32.xlu2 %v1023_v49 }
0x148b   :  { %v1020_v25 = vpop.f32.mrf.mxu0 }
0x14fa   :  { %v1025_v44 = vpop.xlane.xlu2 %1024 }
0x14fb   :  { %v1026_v18 = vsub.f32 %v1019_v10, %v1025_v44 }
0x14fd   :  { %v1027_v13 = vmul.f32 1.442695, %v1026_v18 }
0x14ff   :  { %1270 = vpow2.f32 %v1027_v13 }
0x1505   :  { %v1271_v47 = vpop.eup %1270 }
0x1506   :  { %v1029_v16 = vsel %vm1022_vm9, %v1271_v47, 0.0 }
0x1507   :  { %1030 = vadd.xlane.f32.xlu0 %v1029_v16 }
0x157a   :  { %v1031_v21 = vpop.xlane.xlu0 %1030 }
0x157b   :  { %1272 = vrcp.f32 %v1031_v21  ;;  %v1043_v24 = vand.u32 2147483648, %v1031_v21  ;;  %v1041_v30 = vand.u32 2147483647, %v1031_v21  ;;  %vm1037_vm11 = vweird.f32 %v1031_v21 }
0x157d   :  { %v1044_v27 = vor.u32 1.1754944e-38, %v1043_v24  ;;  %vm1042_vm13 = vcmp.eq.f32.partialorder %v1041_v30, 8.507059e+37 }
0x1581   :  { %v1273_v32 = vpop.eup %1272 }
0x1582   :  { %v1033_v40 = vmul.f32 %v1273_v32, %v1031_v21  ;;  %vm1038_vm10 = vweird.f32 %v1273_v32 }
0x1583   :  { %vm1039_vm12 = vmor %vm1037_vm11, %vm1038_vm10 }
0x1584   :  { %v1034_v23 = vsub.f32 1.0, %v1033_v40 }
0x1586   :  { %v1035_v28 = vmul.f32 %v1273_v32, %v1034_v23 }
0x1588   :  { %v1036_v31 = vadd.f32 %v1273_v32, %v1035_v28 }
0x158a   :  { %v1040_v33 = vsel %vm1039_vm12, %v1273_v32, %v1036_v31 }
0x158b   :  { %v1045_v36 = vsel %vm1042_vm13, %v1044_v27, %v1040_v33 }
0x158c   :  { %v1046_v37 = vmul.f32 %v1271_v47, %v1045_v36 }
0x158e   :  { %v1047_v39 = vsel %vm1022_vm9, %v1046_v37, %v1019_v10 }
0x158f   :  { %1049 = vst.msk [vmem:[#allocation5] sm:$0xff] %vm1048_vm14, %v1047_v39 }
0x1590   :  { %1060 = dma.vmem_to_hbm [thread:$0]  %s1056_s7, 128, %s1058_s16, [#allocation4]  }
0x1591   :  { %1324 = dma.done.wait [#allocation4], 128  }
0x1592   :  { %1325 = vsyncadd [#allocation4], 4294967168 }
0x1593   :  { %1065 = vsyncpa [#allocation3], 1 }
0x1594   :  { %1066 = vsyncpa [#allocation4], 1 }

</bundles_post_ra>
